<compile_context>
chip_gen: v5e
topology: v5e:2x2
jax: 0.10.0
libtpu: 0.0.40
codegen_flags: <defaults>
</compile_context>

<pallas_src>
import jax
import jax.numpy as jnp
from jax import lax
from jax.experimental import pallas as pl
from jax.experimental.pallas import tpu as pltpu

# ----------------------------- config ---------------------------------------
B, L, H, V = 2, 16, 128, 256            # batch, seq, hidden, vocab
CLS_ID, PAD_ID, SEP_ID, UNK_ID, MASK_ID = 0, 1, 2, 3, 4
MLM_PROB = 0.15
MAN_PROB = 0.20


# ----------------------------- fused Pallas kernel ---------------------------
def fused_kernel(ntt_ref, emb_ref, nodes_ref, mlm_lab_ref, edge_lab_ref,
                 w_enc_ref, b_enc_ref, w_lmqa_ref, b_lmqa_ref,
                 out_ref, mix_scratch):
    """Whole forward hot path for the full (tiny) batch, VMEM-resident.

    ntt_ref      : (B, L, L)   f32  nodes->token 0/1 mask
    emb_ref      : (B, L, H)   f32  gathered word embeddings
    nodes_ref    : (B, L, 1)   f32  final nodes mask (0/1)
    mlm_lab_ref  : (B*L, 1)    i32  MLM labels (-100 = ignore)
    edge_lab_ref : (B, L, L)   i32  graph edge labels (-100 = ignore)
    w_enc_ref    : (H, H)      bf16
    b_enc_ref    : (1, H)      f32
    w_lmqa_ref   : (H, V+H)    bf16 (lm_head | qa_outputs fused)
    b_lmqa_ref   : (1, V+H)    f32
    out_ref      : (1, 4)      f32  [lm_loss_sum, lm_valid, g_loss_sum, g_valid]
    mix_scratch  : (B*L, H)    f32  VMEM scratch for batched-M matmuls
    """
    f32 = jnp.float32
    bf16 = jnp.bfloat16

    # ---- 1. per-batch nodes->token averaging + mix --> (B*L, H) scratch ----
    for b in range(B):  # B=2, fully unrolled
        m = ntt_ref[b]                                            # (L, L) f32
        denom = jnp.sum(m, axis=-1, keepdims=True) + 1e-10        # (L, 1)
        mn = m / denom                                            # exact
        emb_b = emb_ref[b]                                        # (L, H) f32
        avg = jnp.dot(mn.astype(bf16), emb_b.astype(bf16),
                      preferred_element_type=f32)                 # (L, H)
        nm = nodes_ref[b]                                         # (L, 1) f32
        mix_scratch[pl.ds(b * L, L), :] = emb_b * (1.0 - nm) + avg * nm

    mixed_all = mix_scratch[...]                                  # (B*L, H)

    # ---- 2. stand-in encoder layer, batched over B (M = B*L) ---------------
    # TODO(synk): `self.encoder.roberta(...)` is an external full RoBERTa
    # transformer passed into __init__; replaced here by one dense+tanh
    # stand-in layer (attn_mask / position_idx not consumed by it).
    seq_all = jnp.tanh(
        jnp.dot(mixed_all.astype(bf16), w_enc_ref[...],
                preferred_element_type=f32) + b_enc_ref[...])     # (B*L, H)

    # ---- 3. fused lm_head + qa matmul (single MXU pass) ---------------------
    cat = jnp.dot(seq_all.astype(bf16), w_lmqa_ref[...],
                  preferred_element_type=f32) + b_lmqa_ref[...]   # (B*L, V+H)
    logits = cat[:, :V]                                           # (B*L, V)
    qa_all = jnp.tanh(cat[:, V:])                                 # (B*L, H)

    # ---- masked-LM cross-entropy (reduced to sums) --------------------------
    labels = mlm_lab_ref[...]                                     # (B*L, 1) i32
    mx = jnp.max(logits, axis=-1, keepdims=True)
    lse = jnp.log(jnp.sum(jnp.exp(logits - mx), axis=-1,
                          keepdims=True)) + mx                    # (B*L, 1)
    iota = lax.broadcasted_iota(jnp.int32, logits.shape, 1)       # once
    picked = jnp.sum(jnp.where(iota == labels, logits, 0.0),
                     axis=-1, keepdims=True)                      # (B*L, 1)
    valid = (labels != -100).astype(f32)                          # (B*L, 1)
    lm_loss = jnp.sum((lse - picked) * valid, axis=0, keepdims=True)  # (1, 1)
    lm_cnt = jnp.sum(valid, axis=0, keepdims=True)                # (1, 1)

    # ---- 4. graph alignment score + 2-class CE (per-batch (L,L) matmul) -----
    g_loss = jnp.zeros((1, 1), f32)
    g_cnt = jnp.zeros((1, 1), f32)
    for b in range(B):
        seq_b = seq_all[b * L:(b + 1) * L, :]                     # (L, H)
        qa_b = qa_all[b * L:(b + 1) * L, :]                       # (L, H)
        # score_logits = tanh(qa(seq)) @ seq^T without an explicit transpose:
        s_log = lax.dot_general(
            qa_b.astype(bf16), seq_b.astype(bf16),
            dimension_numbers=(((1,), (1,)), ((), ())),
            preferred_element_type=f32)                           # (L, L)
        s = jax.nn.sigmoid(s_log)
        lab = edge_lab_ref[b]                                     # (L, L) i32
        # CE over cat([1-s, s], -1) treated as logits (matches original code),
        # in the stable max + log(1+exp(-|diff|)) form.
        l1 = s
        l0 = 1.0 - s
        gmx = jnp.maximum(l0, l1)
        d = jnp.abs(l1 - l0)
        glse = gmx + jnp.log(1.0 + jnp.exp(-d))
        gpicked = jnp.where(lab == 1, l1, l0)
        gvalid = (lab != -100).astype(f32)
        gper = (glse - gpicked) * gvalid                          # (L, L)
        g_loss = g_loss + jnp.sum(
            jnp.sum(gper, axis=-1, keepdims=True), axis=0, keepdims=True)
        g_cnt = g_cnt + jnp.sum(
            jnp.sum(gvalid, axis=-1, keepdims=True), axis=0, keepdims=True)

    # ---- single packed (1, 4) output write ----------------------------------
    lane = lax.broadcasted_iota(jnp.int32, (1, 4), 1)
    out_ref[...] = (jnp.where(lane == 0, lm_loss, 0.0) +
                    jnp.where(lane == 1, lm_cnt, 0.0) +
                    jnp.where(lane == 2, g_loss, 0.0) +
                    jnp.where(lane == 3, g_cnt, 0.0))


def fused_losses(params, ntt, emb, nodes_final, mlm_labels, edge_labels):
    """One gridless pallas_call; whole problem fits in VMEM on v5e/v6e/v7x."""
    # TODO(synk): at real GraphCodeBERT sizes (V~50k, L~640) the lm_head + CE
    # needs a V-tiled streaming logsumexp (grid axis marked "arbitrary"); size
    # V-tiles for ~32 MiB scoped VMEM on v7x (64 MiB physical) while v6e/v5e
    # (128 MiB) can keep the full bf16 w_lm resident.  On v7x a (B,)-parallel
    # grid would also engage the second TensorCore.
    return pl.pallas_call(
        fused_kernel,
        out_shape=jax.ShapeDtypeStruct((1, 4), jnp.float32),
        scratch_shapes=[pltpu.VMEM((B * L, H), jnp.float32)],
    )(
        ntt, emb, nodes_final,
        mlm_labels.reshape(B * L, 1).astype(jnp.int32),
        edge_labels.astype(jnp.int32),
        params["w_enc"], params["b_enc"],
        params["w_lmqa"], params["b_lmqa"],
    )


# ----------------------------- masking glue (JAX) ----------------------------
def mask_tokens_jax(key, inputs):
    labels = inputs
    prob = jnp.full(inputs.shape, MLM_PROB)
    special = (inputs == CLS_ID) | (inputs == SEP_ID)
    prob = jnp.where(special | (inputs == PAD_ID) | (inputs == UNK_ID), 0.0, prob)
    k1, k2, k3, k4 = jax.random.split(key, 4)
    masked = jax.random.bernoulli(k1, prob)
    labels = jnp.where(masked, labels, -100)
    replaced = jax.random.bernoulli(k2, 0.8, inputs.shape) & masked
    new_inputs = jnp.where(replaced, MASK_ID, inputs)
    rand = jax.random.bernoulli(k3, 0.5, inputs.shape) & masked & ~replaced
    random_words = jax.random.randint(k4, inputs.shape, 0, V, dtype=jnp.int32)
    new_inputs = jnp.where(rand, random_words, new_inputs)
    return new_inputs, labels


def _second_stage(key, labels):
    ratio = jnp.sum(labels == 1) / (jnp.sum(labels == 0) + 1e-10)
    prob2 = jnp.where(labels == 1, 1.0, jnp.clip(ratio, 0.0, 1.0))
    mi2 = jax.random.bernoulli(key, prob2)
    return jnp.where(mi2, labels, -100.0)


def mask_edge_jax(key, inputs_ids, attn_mask, nodes_mask):
    labels = attn_mask.astype(jnp.float32)
    prob = jnp.where(nodes_mask, MAN_PROB, 0.0)
    k1, k2 = jax.random.split(key)
    mi = jax.random.bernoulli(k1, prob)                        # (B, L)
    mi3 = mi[:, :, None] & nodes_mask[:, None, :]              # (B, L, L)
    attn_mask = attn_mask & ~mi3
    labels = jnp.where(mi3, labels, -100.0)
    labels = _second_stage(k2, labels)
    return inputs_ids, attn_mask, labels.astype(jnp.int32)


def mask_align_jax(key, inputs_ids, attn_mask, nodes_mask, token_mask):
    labels = attn_mask.astype(jnp.float32)
    prob = jnp.where(nodes_mask, MAN_PROB, 0.0)
    k1, k2 = jax.random.split(key)
    mi = jax.random.bernoulli(k1, prob)                        # (B, L)
    inputs_ids = jnp.where(mi, MASK_ID, inputs_ids)
    mi3 = mi[:, :, None] & token_mask[:, None, :]              # (B, L, L)
    attn_mask = attn_mask & ~mi3 & ~jnp.transpose(mi3, (0, 2, 1))
    labels = jnp.where(mi3, labels, -100.0)
    labels = _second_stage(k2, labels)
    return inputs_ids, attn_mask, labels.astype(jnp.int32)


# ----------------------------- forward ---------------------------------------
def forward(params, key, inputs_ids, position_idx, attn_mask):
    k_mlm, k_branch, k_edge, k_align = jax.random.split(key, 4)

    inputs_ids, mlm_labels = mask_tokens_jax(k_mlm, inputs_ids)
    nodes_mask = position_idx == 0
    token_mask = position_idx >= 2

    use_edge = jax.random.uniform(k_branch) > 0.5
    ids_e, am_e, el_e = mask_edge_jax(k_edge, inputs_ids, attn_mask, nodes_mask)
    ids_a, am_a, el_a = mask_align_jax(k_align, inputs_ids, attn_mask,
                                       nodes_mask, token_mask)
    inputs_ids = jnp.where(use_edge, ids_e, ids_a)
    attn_mask = jnp.where(use_edge, am_e, am_a)
    edge_labels = jnp.where(use_edge, el_e, el_a)

    # embedding gather stays in XLA glue (data-dependent gather)
    # TODO(synk): could be pulled in-kernel (table is only 128 KiB at toy size).
    inputs_embeddings = params["word_emb"][inputs_ids]          # (B, L, H)
    ntt = (nodes_mask[:, :, None] & token_mask[:, None, :] & attn_mask
           ).astype(jnp.float32)
    nodes_final = (nodes_mask & (inputs_ids != MASK_ID)
                   ).astype(jnp.float32)[:, :, None]

    stats = fused_losses(params, ntt, inputs_embeddings, nodes_final,
                         mlm_labels, edge_labels)               # (1, 4)
    lm_loss_sum, lm_cnt = stats[0, 0], stats[0, 1]
    g_loss_sum, g_cnt = stats[0, 2], stats[0, 3]

    masked_lm_loss = jnp.where(lm_cnt > 0,
                               lm_loss_sum / jnp.maximum(lm_cnt, 1.0), 0.0)
    masked_graph_loss = jnp.where(g_cnt > 0,
                                  g_loss_sum / jnp.maximum(g_cnt, 1.0), 0.0)
    has_zero = jnp.sum(edge_labels == 0) != 0
    masked_graph_loss = jnp.where(has_zero, masked_graph_loss, 0.0)
    return masked_lm_loss, masked_graph_loss


# ----------------------------- params ----------------------------------------
def init_params(key):
    kp = jax.random.split(key, 4)
    w_emb = 0.02 * jax.random.normal(kp[0], (V, H), jnp.float32)
    w_enc = 0.02 * jax.random.normal(kp[1], (H, H), jnp.float32)
    w_lm = 0.02 * jax.random.normal(kp[2], (H, V), jnp.float32)
    w_qa = 0.02 * jax.random.normal(kp[3], (H, H), jnp.float32)   # nn.Linear(H, H)
    b_enc = jnp.zeros((H,), jnp.float32)
    b_lm = jnp.zeros((V,), jnp.float32)
    b_qa = jnp.zeros((H,), jnp.float32)
    return {
        "word_emb": w_emb,
        # cast to bf16 / fuse lm+qa ONCE at init (no per-call casts / concats)
        "w_enc": w_enc.astype(jnp.bfloat16),
        "b_enc": b_enc.reshape(1, H),
        "w_lmqa": jnp.concatenate([w_lm, w_qa], axis=1).astype(jnp.bfloat16),
        "b_lmqa": jnp.concatenate([b_lm, b_qa]).reshape(1, V + H),
    }


# ----------------------------- main ------------------------------------------
if __name__ == "__main__":
    params = init_params(jax.random.PRNGKey(42))

    key = jax.random.PRNGKey(0)
    k_ids, k_fwd = jax.random.split(key)
    inputs_ids = jax.random.randint(k_ids, (B, L), 5, V, dtype=jnp.int32)
    # tokens get positions >= 2 (first 10), graph nodes get position 0 (last 6)
    position_idx = jnp.tile(
        jnp.concatenate([jnp.arange(2, 12, dtype=jnp.int32),
                         jnp.zeros((6,), jnp.int32)]), (B, 1))
    valid = jnp.arange(L) < 14
    attn_mask = (valid[:, None] & valid[None, :])[None].repeat(B, axis=0)

    lm_loss, graph_loss = jax.jit(forward)(params, k_fwd, inputs_ids,
                                           position_idx, attn_mask)
    jax.block_until_ready((lm_loss, graph_loss))
    print("KERNEL_OK")
</pallas_src>

<mosaic_0001>
module attributes {stable_mosaic.version = 11 : i64} {
  func.func @fused_kernel(%arg0: memref<2x16x16xf32, #tpu.memory_space<vmem>>, %arg1: memref<2x16x128xf32, #tpu.memory_space<vmem>>, %arg2: memref<2x16x1xf32, #tpu.memory_space<vmem>>, %arg3: memref<32x1xi32, #tpu.memory_space<vmem>>, %arg4: memref<2x16x16xi32, #tpu.memory_space<vmem>>, %arg5: memref<128x128xbf16, #tpu.memory_space<vmem>>, %arg6: memref<1x128xf32, #tpu.memory_space<vmem>>, %arg7: memref<128x384xbf16, #tpu.memory_space<vmem>>, %arg8: memref<1x384xf32, #tpu.memory_space<vmem>>, %arg9: memref<1x4xf32, #tpu.memory_space<vmem>>, %arg10: memref<32x128xf32, #tpu.memory_space<vmem>>) attributes {dimension_semantics = [], scalar_prefetch = 0 : i64, scratch_operands = 1 : i64, tpu.core_type = #tpu.core_type<tc>} {
    %c0 = arith.constant 0 : index
    %c0_0 = arith.constant 0 : index
    %c0_1 = arith.constant 0 : index
    %0 = vector.load %arg0[%c0, %c0_0, %c0_1] : memref<2x16x16xf32, #tpu.memory_space<vmem>>, vector<1x16x16xf32>
    %1 = vector.shape_cast %0 : vector<1x16x16xf32> to vector<16x16xf32>
    %cst = arith.constant dense<0.000000e+00> : vector<16xf32>
    %2 = vector.multi_reduction <add>, %1, %cst [1] : vector<16x16xf32> to vector<16xf32>
    %3 = vector.shape_cast %2 : vector<16xf32> to vector<16x1xf32>
    %cst_2 = arith.constant 1.000000e-10 : f32
    %4 = vector.broadcast %cst_2 : f32 to vector<16x1xf32>
    %5 = arith.addf %3, %4 : vector<16x1xf32>
    %6 = vector.broadcast %5 : vector<16x1xf32> to vector<16x16xf32>
    %7 = arith.divf %1, %6 : vector<16x16xf32>
    %c0_3 = arith.constant 0 : index
    %c0_4 = arith.constant 0 : index
    %c0_5 = arith.constant 0 : index
    %8 = vector.load %arg1[%c0_3, %c0_4, %c0_5] : memref<2x16x128xf32, #tpu.memory_space<vmem>>, vector<1x16x128xf32>
    %9 = vector.shape_cast %8 : vector<1x16x128xf32> to vector<16x128xf32>
    %10 = arith.truncf %7 : vector<16x16xf32> to vector<16x16xbf16>
    %11 = arith.truncf %9 : vector<16x128xf32> to vector<16x128xbf16>
    %cst_6 = arith.constant dense<0.000000e+00> : vector<16x128xf32>
    %12 = tpu.matmul %10, %11, %cst_6 {dimension_numbers = #tpu.dot_dimension_numbers<[1], [0], [0], [1], [0, 0, 1, 1], [], []>} : vector<16x16xbf16>, vector<16x128xbf16>, vector<16x128xf32> -> vector<16x128xf32>
    %c0_7 = arith.constant 0 : index
    %c0_8 = arith.constant 0 : index
    %c0_9 = arith.constant 0 : index
    %13 = vector.load %arg2[%c0_7, %c0_8, %c0_9] : memref<2x16x1xf32, #tpu.memory_space<vmem>>, vector<1x16x1xf32>
    %14 = vector.shape_cast %13 : vector<1x16x1xf32> to vector<16x1xf32>
    %cst_10 = arith.constant 1.000000e+00 : f32
    %15 = vector.broadcast %cst_10 : f32 to vector<16x1xf32>
    %16 = arith.subf %15, %14 : vector<16x1xf32>
    %17 = vector.broadcast %16 : vector<16x1xf32> to vector<16x128xf32>
    %18 = arith.mulf %9, %17 : vector<16x128xf32>
    %19 = vector.broadcast %14 : vector<16x1xf32> to vector<16x128xf32>
    %20 = arith.mulf %12, %19 : vector<16x128xf32>
    %21 = arith.addf %18, %20 : vector<16x128xf32>
    %c0_11 = arith.constant 0 : index
    %c0_12 = arith.constant 0 : index
    %22 = vector.load %arg10[%c0_11, %c0_12] : memref<32x128xf32, #tpu.memory_space<vmem>>, vector<16x128xf32>
    tpu.vector_store %arg10[%c0_11, %c0_12], %21 {strides = array<i32>} : memref<32x128xf32, #tpu.memory_space<vmem>>, vector<16x128xf32>,
    %c1 = arith.constant 1 : index
    %c0_13 = arith.constant 0 : index
    %c0_14 = arith.constant 0 : index
    %23 = vector.load %arg0[%c1, %c0_13, %c0_14] : memref<2x16x16xf32, #tpu.memory_space<vmem>>, vector<1x16x16xf32>
    %24 = vector.shape_cast %23 : vector<1x16x16xf32> to vector<16x16xf32>
    %cst_15 = arith.constant dense<0.000000e+00> : vector<16xf32>
    %25 = vector.multi_reduction <add>, %24, %cst_15 [1] : vector<16x16xf32> to vector<16xf32>
    %26 = vector.shape_cast %25 : vector<16xf32> to vector<16x1xf32>
    %cst_16 = arith.constant 1.000000e-10 : f32
    %27 = vector.broadcast %cst_16 : f32 to vector<16x1xf32>
    %28 = arith.addf %26, %27 : vector<16x1xf32>
    %29 = vector.broadcast %28 : vector<16x1xf32> to vector<16x16xf32>
    %30 = arith.divf %24, %29 : vector<16x16xf32>
    %c1_17 = arith.constant 1 : index
    %c0_18 = arith.constant 0 : index
    %c0_19 = arith.constant 0 : index
    %31 = vector.load %arg1[%c1_17, %c0_18, %c0_19] : memref<2x16x128xf32, #tpu.memory_space<vmem>>, vector<1x16x128xf32>
    %32 = vector.shape_cast %31 : vector<1x16x128xf32> to vector<16x128xf32>
    %33 = arith.truncf %30 : vector<16x16xf32> to vector<16x16xbf16>
    %34 = arith.truncf %32 : vector<16x128xf32> to vector<16x128xbf16>
    %cst_20 = arith.constant dense<0.000000e+00> : vector<16x128xf32>
    %35 = tpu.matmul %33, %34, %cst_20 {dimension_numbers = #tpu.dot_dimension_numbers<[1], [0], [0], [1], [0, 0, 1, 1], [], []>} : vector<16x16xbf16>, vector<16x128xbf16>, vector<16x128xf32> -> vector<16x128xf32>
    %c1_21 = arith.constant 1 : index
    %c0_22 = arith.constant 0 : index
    %c0_23 = arith.constant 0 : index
    %36 = vector.load %arg2[%c1_21, %c0_22, %c0_23] : memref<2x16x1xf32, #tpu.memory_space<vmem>>, vector<1x16x1xf32>
    %37 = vector.shape_cast %36 : vector<1x16x1xf32> to vector<16x1xf32>
    %cst_24 = arith.constant 1.000000e+00 : f32
    %38 = vector.broadcast %cst_24 : f32 to vector<16x1xf32>
    %39 = arith.subf %38, %37 : vector<16x1xf32>
    %40 = vector.broadcast %39 : vector<16x1xf32> to vector<16x128xf32>
    %41 = arith.mulf %32, %40 : vector<16x128xf32>
    %42 = vector.broadcast %37 : vector<16x1xf32> to vector<16x128xf32>
    %43 = arith.mulf %35, %42 : vector<16x128xf32>
    %44 = arith.addf %41, %43 : vector<16x128xf32>
    %c16 = arith.constant 16 : index
    %c0_25 = arith.constant 0 : index
    %45 = vector.load %arg10[%c16, %c0_25] : memref<32x128xf32, #tpu.memory_space<vmem>>, vector<16x128xf32>
    tpu.vector_store %arg10[%c16, %c0_25], %44 {strides = array<i32>} : memref<32x128xf32, #tpu.memory_space<vmem>>, vector<16x128xf32>,
    %c0_26 = arith.constant 0 : index
    %c0_27 = arith.constant 0 : index
    %46 = vector.load %arg10[%c0_26, %c0_27] : memref<32x128xf32, #tpu.memory_space<vmem>>, vector<32x128xf32>
    %47 = arith.truncf %46 : vector<32x128xf32> to vector<32x128xbf16>
    %c0_28 = arith.constant 0 : index
    %c0_29 = arith.constant 0 : index
    %48 = vector.load %arg5[%c0_28, %c0_29] : memref<128x128xbf16, #tpu.memory_space<vmem>>, vector<128x128xbf16>
    %cst_30 = arith.constant dense<0.000000e+00> : vector<32x128xf32>
    %49 = tpu.matmul %47, %48, %cst_30 {dimension_numbers = #tpu.dot_dimension_numbers<[1], [0], [0], [1], [0, 0, 1, 1], [], []>} : vector<32x128xbf16>, vector<128x128xbf16>, vector<32x128xf32> -> vector<32x128xf32>
    %c0_31 = arith.constant 0 : index
    %c0_32 = arith.constant 0 : index
    %50 = vector.load %arg6[%c0_31, %c0_32] : memref<1x128xf32, #tpu.memory_space<vmem>>, vector<1x128xf32>
    %51 = vector.broadcast %50 : vector<1x128xf32> to vector<32x128xf32>
    %52 = arith.addf %49, %51 : vector<32x128xf32>
    %53 = math.tanh %52 : vector<32x128xf32>
    %54 = arith.truncf %53 : vector<32x128xf32> to vector<32x128xbf16>
    %c0_33 = arith.constant 0 : index
    %c0_34 = arith.constant 0 : index
    %55 = vector.load %arg7[%c0_33, %c0_34] : memref<128x384xbf16, #tpu.memory_space<vmem>>, vector<128x384xbf16>
    %cst_35 = arith.constant dense<0.000000e+00> : vector<32x384xf32>
    %56 = tpu.matmul %54, %55, %cst_35 {dimension_numbers = #tpu.dot_dimension_numbers<[1], [0], [0], [1], [0, 0, 1, 1], [], []>} : vector<32x128xbf16>, vector<128x384xbf16>, vector<32x384xf32> -> vector<32x384xf32>
    %c0_36 = arith.constant 0 : index
    %c0_37 = arith.constant 0 : index
    %57 = vector.load %arg8[%c0_36, %c0_37] : memref<1x384xf32, #tpu.memory_space<vmem>>, vector<1x384xf32>
    %58 = vector.broadcast %57 : vector<1x384xf32> to vector<32x384xf32>
    %59 = arith.addf %56, %58 : vector<32x384xf32>
    %60 = vector.extract_strided_slice %59 {offsets = [0, 0], sizes = [32, 256], strides = [1, 1]} : vector<32x384xf32> to vector<32x256xf32>
    %61 = vector.extract_strided_slice %59 {offsets = [0, 256], sizes = [32, 128], strides = [1, 1]} : vector<32x384xf32> to vector<32x128xf32>
    %62 = math.tanh %61 : vector<32x128xf32>
    %c0_38 = arith.constant 0 : index
    %c0_39 = arith.constant 0 : index
    %63 = vector.load %arg3[%c0_38, %c0_39] : memref<32x1xi32, #tpu.memory_space<vmem>>, vector<32x1xi32>
    %cst_40 = arith.constant dense<0xFF800000> : vector<32xf32>
    %64 = vector.multi_reduction <maximumf>, %60, %cst_40 [1] : vector<32x256xf32> to vector<32xf32>
    %65 = vector.shape_cast %64 : vector<32xf32> to vector<32x1xf32>
    %66 = vector.broadcast %65 : vector<32x1xf32> to vector<32x256xf32>
    %67 = arith.subf %60, %66 : vector<32x256xf32>
    %68 = math.exp %67 : vector<32x256xf32>
    %cst_41 = arith.constant dense<0.000000e+00> : vector<32xf32>
    %69 = vector.multi_reduction <add>, %68, %cst_41 [1] : vector<32x256xf32> to vector<32xf32>
    %70 = vector.shape_cast %69 : vector<32xf32> to vector<32x1xf32>
    %71 = math.log %70 : vector<32x1xf32>
    %72 = arith.addf %71, %65 : vector<32x1xf32>
    %73 = tpu.iota {dimensions = array<i32: 1>} : vector<32x256xi32>
    %74 = vector.broadcast %63 : vector<32x1xi32> to vector<32x256xi32>
    %75 = arith.cmpi eq, %73, %74 : vector<32x256xi32>
    %cst_42 = arith.constant 0.000000e+00 : f32
    %76 = vector.broadcast %cst_42 : f32 to vector<32x256xf32>
    %77 = arith.select %75, %60, %76 : vector<32x256xi1>, vector<32x256xf32>
    %cst_43 = arith.constant dense<0.000000e+00> : vector<32xf32>
    %78 = vector.multi_reduction <add>, %77, %cst_43 [1] : vector<32x256xf32> to vector<32xf32>
    %79 = vector.shape_cast %78 : vector<32xf32> to vector<32x1xf32>
    %c-100_i32 = arith.constant -100 : i32
    %80 = vector.broadcast %c-100_i32 : i32 to vector<32x1xi32>
    %81 = arith.cmpi ne, %63, %80 : vector<32x1xi32>
    %82 = arith.extui %81 : vector<32x1xi1> to vector<32x1xi32>
    %83 = arith.sitofp %82 : vector<32x1xi32> to vector<32x1xf32>
    %84 = arith.subf %72, %79 : vector<32x1xf32>
    %85 = arith.mulf %84, %83 : vector<32x1xf32>
    %cst_44 = arith.constant dense<0.000000e+00> : vector<1xf32>
    %86 = vector.multi_reduction <add>, %85, %cst_44 [0] : vector<32x1xf32> to vector<1xf32>
    %87 = vector.shape_cast %86 : vector<1xf32> to vector<1x1xf32>
    %cst_45 = arith.constant dense<0.000000e+00> : vector<1xf32>
    %88 = vector.multi_reduction <add>, %83, %cst_45 [0] : vector<32x1xf32> to vector<1xf32>
    %89 = vector.shape_cast %88 : vector<1xf32> to vector<1x1xf32>
    %cst_46 = arith.constant 0.000000e+00 : f32
    %90 = vector.broadcast %cst_46 : f32 to vector<1x1xf32>
    %cst_47 = arith.constant 0.000000e+00 : f32
    %91 = vector.broadcast %cst_47 : f32 to vector<1x1xf32>
    %92 = vector.extract_strided_slice %53 {offsets = [0, 0], sizes = [16, 128], strides = [1, 1]} : vector<32x128xf32> to vector<16x128xf32>
    %93 = vector.extract_strided_slice %62 {offsets = [0, 0], sizes = [16, 128], strides = [1, 1]} : vector<32x128xf32> to vector<16x128xf32>
    %94 = arith.truncf %93 : vector<16x128xf32> to vector<16x128xbf16>
    %95 = arith.truncf %92 : vector<16x128xf32> to vector<16x128xbf16>
    %cst_48 = arith.constant dense<0.000000e+00> : vector<16x16xf32>
    %96 = tpu.matmul %94, %95, %cst_48 {dimension_numbers = #tpu.dot_dimension_numbers<[1], [1], [0], [0], [0, 0, 1, 0], [], []>} : vector<16x128xbf16>, vector<16x128xbf16>, vector<16x16xf32> -> vector<16x16xf32>
    %97 = arith.negf %96 : vector<16x16xf32>
    %98 = math.exp %97 : vector<16x16xf32>
    %cst_49 = arith.constant 1.000000e+00 : f32
    %99 = vector.broadcast %cst_49 : f32 to vector<16x16xf32>
    %100 = arith.addf %99, %98 : vector<16x16xf32>
    %101 = arith.divf %99, %100 : vector<16x16xf32>
    %c0_50 = arith.constant 0 : index
    %c0_51 = arith.constant 0 : index
    %c0_52 = arith.constant 0 : index
    %102 = vector.load %arg4[%c0_50, %c0_51, %c0_52] : memref<2x16x16xi32, #tpu.memory_space<vmem>>, vector<1x16x16xi32>
    %103 = vector.shape_cast %102 : vector<1x16x16xi32> to vector<16x16xi32>
    %cst_53 = arith.constant 1.000000e+00 : f32
    %104 = vector.broadcast %cst_53 : f32 to vector<16x16xf32>
    %105 = arith.subf %104, %101 : vector<16x16xf32>
    %106 = arith.maximumf %105, %101 : vector<16x16xf32>
    %107 = arith.subf %101, %105 : vector<16x16xf32>
    %108 = math.absf %107 : vector<16x16xf32>
    %cst_54 = arith.constant 0.000000e+00 : f32
    %109 = vector.broadcast %cst_54 : f32 to vector<16x16xf32>
    %110 = arith.subf %109, %108 : vector<16x16xf32>
    %111 = math.exp %110 : vector<16x16xf32>
    %cst_55 = arith.constant 1.000000e+00 : f32
    %112 = vector.broadcast %cst_55 : f32 to vector<16x16xf32>
    %113 = arith.addf %112, %111 : vector<16x16xf32>
    %114 = math.log %113 : vector<16x16xf32>
    %115 = arith.addf %106, %114 : vector<16x16xf32>
    %c1_i32 = arith.constant 1 : i32
    %116 = vector.broadcast %c1_i32 : i32 to vector<16x16xi32>
    %117 = arith.cmpi eq, %103, %116 : vector<16x16xi32>
    %118 = arith.select %117, %101, %105 : vector<16x16xi1>, vector<16x16xf32>
    %c-100_i32_56 = arith.constant -100 : i32
    %119 = vector.broadcast %c-100_i32_56 : i32 to vector<16x16xi32>
    %120 = arith.cmpi ne, %103, %119 : vector<16x16xi32>
    %121 = arith.extui %120 : vector<16x16xi1> to vector<16x16xi32>
    %122 = arith.sitofp %121 : vector<16x16xi32> to vector<16x16xf32>
    %123 = arith.subf %115, %118 : vector<16x16xf32>
    %124 = arith.mulf %123, %122 : vector<16x16xf32>
    %cst_57 = arith.constant dense<0.000000e+00> : vector<16xf32>
    %125 = vector.multi_reduction <add>, %124, %cst_57 [1] : vector<16x16xf32> to vector<16xf32>
    %126 = vector.shape_cast %125 : vector<16xf32> to vector<16x1xf32>
    %cst_58 = arith.constant dense<0.000000e+00> : vector<1xf32>
    %127 = vector.multi_reduction <add>, %126, %cst_58 [0] : vector<16x1xf32> to vector<1xf32>
    %128 = vector.shape_cast %127 : vector<1xf32> to vector<1x1xf32>
    %129 = arith.addf %90, %128 : vector<1x1xf32>
    %cst_59 = arith.constant dense<0.000000e+00> : vector<16xf32>
    %130 = vector.multi_reduction <add>, %122, %cst_59 [1] : vector<16x16xf32> to vector<16xf32>
    %131 = vector.shape_cast %130 : vector<16xf32> to vector<16x1xf32>
    %cst_60 = arith.constant dense<0.000000e+00> : vector<1xf32>
    %132 = vector.multi_reduction <add>, %131, %cst_60 [0] : vector<16x1xf32> to vector<1xf32>
    %133 = vector.shape_cast %132 : vector<1xf32> to vector<1x1xf32>
    %134 = arith.addf %91, %133 : vector<1x1xf32>
    %135 = vector.extract_strided_slice %53 {offsets = [16, 0], sizes = [16, 128], strides = [1, 1]} : vector<32x128xf32> to vector<16x128xf32>
    %136 = vector.extract_strided_slice %62 {offsets = [16, 0], sizes = [16, 128], strides = [1, 1]} : vector<32x128xf32> to vector<16x128xf32>
    %137 = arith.truncf %136 : vector<16x128xf32> to vector<16x128xbf16>
    %138 = arith.truncf %135 : vector<16x128xf32> to vector<16x128xbf16>
    %cst_61 = arith.constant dense<0.000000e+00> : vector<16x16xf32>
    %139 = tpu.matmul %137, %138, %cst_61 {dimension_numbers = #tpu.dot_dimension_numbers<[1], [1], [0], [0], [0, 0, 1, 0], [], []>} : vector<16x128xbf16>, vector<16x128xbf16>, vector<16x16xf32> -> vector<16x16xf32>
    %140 = arith.negf %139 : vector<16x16xf32>
    %141 = math.exp %140 : vector<16x16xf32>
    %cst_62 = arith.constant 1.000000e+00 : f32
    %142 = vector.broadcast %cst_62 : f32 to vector<16x16xf32>
    %143 = arith.addf %142, %141 : vector<16x16xf32>
    %144 = arith.divf %142, %143 : vector<16x16xf32>
    %c1_63 = arith.constant 1 : index
    %c0_64 = arith.constant 0 : index
    %c0_65 = arith.constant 0 : index
    %145 = vector.load %arg4[%c1_63, %c0_64, %c0_65] : memref<2x16x16xi32, #tpu.memory_space<vmem>>, vector<1x16x16xi32>
    %146 = vector.shape_cast %145 : vector<1x16x16xi32> to vector<16x16xi32>
    %cst_66 = arith.constant 1.000000e+00 : f32
    %147 = vector.broadcast %cst_66 : f32 to vector<16x16xf32>
    %148 = arith.subf %147, %144 : vector<16x16xf32>
    %149 = arith.maximumf %148, %144 : vector<16x16xf32>
    %150 = arith.subf %144, %148 : vector<16x16xf32>
    %151 = math.absf %150 : vector<16x16xf32>
    %cst_67 = arith.constant 0.000000e+00 : f32
    %152 = vector.broadcast %cst_67 : f32 to vector<16x16xf32>
    %153 = arith.subf %152, %151 : vector<16x16xf32>
    %154 = math.exp %153 : vector<16x16xf32>
    %cst_68 = arith.constant 1.000000e+00 : f32
    %155 = vector.broadcast %cst_68 : f32 to vector<16x16xf32>
    %156 = arith.addf %155, %154 : vector<16x16xf32>
    %157 = math.log %156 : vector<16x16xf32>
    %158 = arith.addf %149, %157 : vector<16x16xf32>
    %c1_i32_69 = arith.constant 1 : i32
    %159 = vector.broadcast %c1_i32_69 : i32 to vector<16x16xi32>
    %160 = arith.cmpi eq, %146, %159 : vector<16x16xi32>
    %161 = arith.select %160, %144, %148 : vector<16x16xi1>, vector<16x16xf32>
    %c-100_i32_70 = arith.constant -100 : i32
    %162 = vector.broadcast %c-100_i32_70 : i32 to vector<16x16xi32>
    %163 = arith.cmpi ne, %146, %162 : vector<16x16xi32>
    %164 = arith.extui %163 : vector<16x16xi1> to vector<16x16xi32>
    %165 = arith.sitofp %164 : vector<16x16xi32> to vector<16x16xf32>
    %166 = arith.subf %158, %161 : vector<16x16xf32>
    %167 = arith.mulf %166, %165 : vector<16x16xf32>
    %cst_71 = arith.constant dense<0.000000e+00> : vector<16xf32>
    %168 = vector.multi_reduction <add>, %167, %cst_71 [1] : vector<16x16xf32> to vector<16xf32>
    %169 = vector.shape_cast %168 : vector<16xf32> to vector<16x1xf32>
    %cst_72 = arith.constant dense<0.000000e+00> : vector<1xf32>
    %170 = vector.multi_reduction <add>, %169, %cst_72 [0] : vector<16x1xf32> to vector<1xf32>
    %171 = vector.shape_cast %170 : vector<1xf32> to vector<1x1xf32>
    %172 = arith.addf %129, %171 : vector<1x1xf32>
    %cst_73 = arith.constant dense<0.000000e+00> : vector<16xf32>
    %173 = vector.multi_reduction <add>, %165, %cst_73 [1] : vector<16x16xf32> to vector<16xf32>
    %174 = vector.shape_cast %173 : vector<16xf32> to vector<16x1xf32>
    %cst_74 = arith.constant dense<0.000000e+00> : vector<1xf32>
    %175 = vector.multi_reduction <add>, %174, %cst_74 [0] : vector<16x1xf32> to vector<1xf32>
    %176 = vector.shape_cast %175 : vector<1xf32> to vector<1x1xf32>
    %177 = arith.addf %134, %176 : vector<1x1xf32>
    %178 = tpu.iota {dimensions = array<i32: 1>} : vector<1x4xi32>
    %c0_i32 = arith.constant 0 : i32
    %179 = vector.broadcast %c0_i32 : i32 to vector<1x4xi32>
    %180 = arith.cmpi eq, %178, %179 : vector<1x4xi32>
    %cst_75 = arith.constant 0.000000e+00 : f32
    %181 = vector.shape_cast %87 : vector<1x1xf32> to vector<1x1xf32>
    %182 = vector.broadcast %181 : vector<1x1xf32> to vector<1x4xf32>
    %183 = vector.broadcast %cst_75 : f32 to vector<1x4xf32>
    %184 = arith.select %180, %182, %183 : vector<1x4xi1>, vector<1x4xf32>
    %c1_i32_76 = arith.constant 1 : i32
    %185 = vector.broadcast %c1_i32_76 : i32 to vector<1x4xi32>
    %186 = arith.cmpi eq, %178, %185 : vector<1x4xi32>
    %cst_77 = arith.constant 0.000000e+00 : f32
    %187 = vector.shape_cast %89 : vector<1x1xf32> to vector<1x1xf32>
    %188 = vector.broadcast %187 : vector<1x1xf32> to vector<1x4xf32>
    %189 = vector.broadcast %cst_77 : f32 to vector<1x4xf32>
    %190 = arith.select %186, %188, %189 : vector<1x4xi1>, vector<1x4xf32>
    %191 = arith.addf %184, %190 : vector<1x4xf32>
    %c2_i32 = arith.constant 2 : i32
    %192 = vector.broadcast %c2_i32 : i32 to vector<1x4xi32>
    %193 = arith.cmpi eq, %178, %192 : vector<1x4xi32>
    %cst_78 = arith.constant 0.000000e+00 : f32
    %194 = vector.shape_cast %172 : vector<1x1xf32> to vector<1x1xf32>
    %195 = vector.broadcast %194 : vector<1x1xf32> to vector<1x4xf32>
    %196 = vector.broadcast %cst_78 : f32 to vector<1x4xf32>
    %197 = arith.select %193, %195, %196 : vector<1x4xi1>, vector<1x4xf32>
    %198 = arith.addf %191, %197 : vector<1x4xf32>
    %c3_i32 = arith.constant 3 : i32
    %199 = vector.broadcast %c3_i32 : i32 to vector<1x4xi32>
    %200 = arith.cmpi eq, %178, %199 : vector<1x4xi32>
    %cst_79 = arith.constant 0.000000e+00 : f32
    %201 = vector.shape_cast %177 : vector<1x1xf32> to vector<1x1xf32>
    %202 = vector.broadcast %201 : vector<1x1xf32> to vector<1x4xf32>
    %203 = vector.broadcast %cst_79 : f32 to vector<1x4xf32>
    %204 = arith.select %200, %202, %203 : vector<1x4xi1>, vector<1x4xf32>
    %205 = arith.addf %198, %204 : vector<1x4xf32>
    %c0_80 = arith.constant 0 : index
    %c0_81 = arith.constant 0 : index
    %206 = vector.load %arg9[%c0_80, %c0_81] : memref<1x4xf32, #tpu.memory_space<vmem>>, vector<1x4xf32>
    tpu.vector_store %arg9[%c0_80, %c0_81], %205 {strides = array<i32>} : memref<1x4xf32, #tpu.memory_space<vmem>>, vector<1x4xf32>,
    return
  }
}

</mosaic_0001>

<bundles_post_ra>
// kernel: forward.1
= control target key start
LH: loop header
LB: loop body
LE: loop exit
PB: predicated region body
PF: predicated region fallthrough
CT: control target
= control target key end

     0   :  { %vm35_vm0 = vcmask 130048   ;;  %v1239_v10 = vmov 0   ;;  %s1777_s0 = inlined_call_operand.vmem [shape: f32[2,16,16], index: 0, kind: input, shape index: {}]   ;;  %s1778_s2 = inlined_call_operand.vmem [shape: f32[2,16,1], index: 2, kind: input, shape index: {}]   ;;  %s1779_s1 = inlined_call_operand.vmem [shape: f32[2,16,128], index: 1, kind: input, shape index: {}]   ;;  %s1780_s3 = inlined_call_operand.vmem [shape: s32[32,1], index: 3, kind: input, shape index: {}]   ;;  %s1781_s6 = inlined_call_operand.vmem [shape: f32[1,128], index: 6, kind: input, shape index: {}]   ;;  %s1782_s5 = inlined_call_operand.vmem [shape: bf16[128,128], index: 5, kind: input, shape index: {}]   ;;  %s1783_s7 = inlined_call_operand.vmem [shape: bf16[128,384], index: 7, kind: input, shape index: {}]   ;;  %s1784_s8 = inlined_call_operand.vmem [shape: f32[1,384], index: 8, kind: input, shape index: {}]   ;;  %s1785_s4 = inlined_call_operand.vmem [shape: s32[2,16,16], index: 4, kind: input, shape index: {}]   ;;  %s1786_s9 = inlined_call_operand.vmem [shape: f32[1,4], index: 9, kind: output, shape index: {}]  }
   0x1   :  { %v1294_v0 = vld [vmem:[%s1777_s0 + $0x10] sm:$0xff]  ;;  %v1299_v1 = vld [vmem:[%s1777_s0] sm:$0xff]  ;;  %v1308_v4 = vld [vmem:[%s1777_s0 + $0x18] sm:$0xff]  ;;  %1155 = vset.pattern.permute.xlu2 %v1239_v10  ;;  %1156 = vset.pattern.permute.xlu0 %v1239_v10 }
   0x2   :  { %v130_v2 = vsel %vm35_vm0, %v1294_v0, 0.0  ;;  %v36_v3 = vsel %vm35_vm0, %v1299_v1, 0.0  ;;  %v1313_v5 = vld [vmem:[%s1777_s0 + $0x8] sm:$0xff]  ;;  %v133_v6 = vsel %vm35_vm0, %v1308_v4, 0.0  ;;  %v95_v8 = vld [vmem:[%s1778_s2] sm:$0xff]  ;;  %1157 = vset.pattern.permute.xlu1 %v1239_v10  ;;  %v977_v13 = vld [vmem:[%s1778_s2 + $0x10] sm:$0xff] }
   0x3   :  { %131 = vadd.xlane.f32.xlu1 %v130_v2  ;;  %37 = vadd.xlane.f32.xlu0 %v36_v3  ;;  %v39_v7 = vsel %vm35_vm0, %v1313_v5, 0.0  ;;  %v97_v9 = vsub.f32 1.0, %v95_v8  ;;  %v96_v11 = vld [vmem:[%s1778_s2 + $0x8] sm:$0xff]  ;;  %v193_v14 = vsub.f32 1.0, %v977_v13  ;;  %v978_v15 = vld [vmem:[%s1778_s2 + $0x18] sm:$0xff]  ;;  %v1334_v16 = vld [vmem:[%s1779_s1] sm:$0xff] }
   0x4   :  { %v98_v12 = vsub.f32 1.0, %v96_v11  ;;  %v1339_v17 = vld [vmem:[%s1779_s1 + $0x8] sm:$0xff]  ;;  %v194_v18 = vsub.f32 1.0, %v978_v15  ;;  %v1346_v20 = vld [vmem:[%s1779_s1 + $0x10] sm:$0xff]  ;;  %v1351_v21 = vld [vmem:[%s1779_s1 + $0x18] sm:$0xff] }
   0x5   :  { %101 = vperm.xlu2 %1155, %v97_v9   ;;  %v77_v19 = vpack.c.bf16 %v1339_v17, %v1334_v16  ;;  %v172_v22 = vpack.c.bf16 %v1351_v21, %v1346_v20  ;;  %v1358_v42 = vld [vmem:[%s1780_s3] sm:$0xff]  ;;  %v1075_v58 = vld [vmem:[%s1783_s7 + $0x84] sm:$0xf0] }
   0x6   :  { %v1087_v49 = vld [vmem:[%s1783_s7 + $0x9c] sm:$0xf0]  ;;  %v1145_v55 = vld [vmem:[%s1783_s7 + $0x80] sm:$0xf0] }
   0x7   :  { %88 = vmatpush.bf16.msra.mxu0 %v77_v19  ;;  %183 = vmatpush.bf16.msra.mxu1 %v172_v22 }
   0xb   :  { %134 = vadd.xlane.f32.xlu1 %v133_v6  ;;  %40 = vadd.xlane.f32.xlu0 %v39_v7 }
   0xd   :  { %106 = vperm.xlu2 %1155, %v98_v12  }
  0x15   :  { %197 = vperm.xlu2 %1155, %v193_v14  }
  0x1d   :  { %202 = vperm.xlu2 %1155, %v194_v18  }
  0x1f   :  { %113 = vperm.xlu0 %1156, %v95_v8  }
  0x24   :  { %118 = vperm.xlu1 %1157, %v96_v11  }
  0x25   :  { %209 = vperm.xlu2 %1155, %v977_v13  }
  0x2d   :  { %214 = vperm.xlu2 %1155, %v978_v15  }
  0x35   :  { %619 = vperm.xlu2 %1155, %v1358_v42  }
  0x76   :  { %v132_v23 = vpop.xlane.xlu1 %131  ;;  %v38_v24 = vpop.xlane.xlu0 %37 }
  0x77   :  { %v136_v25 = vadd.f32 1e-10, %v132_v23  ;;  %v42_v26 = vadd.f32 1e-10, %v38_v24 }
  0x79   :  { %1159 = vrcp.f32 %v136_v25  ;;  %vm143_vm1 = vweird.f32 %v136_v25  ;;  %v147_v40 = vand.u32 2147483647, %v136_v25  ;;  %v149_v41 = vand.u32 2147483648, %v136_v25 }
  0x7a   :  { %1161 = vrcp.f32 %v42_v26  ;;  %vm49_vm3 = vweird.f32 %v42_v26  ;;  %v55_v45 = vand.u32 2147483648, %v42_v26  ;;  %v53_v54 = vand.u32 2147483647, %v42_v26 }
  0x7b   :  { %vm1365_vm8 = vcmp.eq.f32.partialorder %v147_v40, 8.507059e+37  ;;  %v150_v56 = vor.u32 1.1754944e-38, %v149_v41  ;;  %v1105_v40 = vld [vmem:[%s1783_s7 + $0xb0] sm:$0xf]  ;;  %v1152_v41 = vld [vmem:[%s1783_s7 + $0xb8] sm:$0xf0] }
  0x7c   :  { %v56_v6 = vor.u32 1.1754944e-38, %v55_v45  ;;  %vm54_vm13 = vcmp.eq.f32.partialorder %v53_v54, 8.507059e+37  ;;  %v1085_v45 = vld [vmem:[%s1783_s7 + $0x90] sm:$0xf]  ;;  %v1073_v54 = vld [vmem:[%s1783_s7 + $0x78] sm:$0xf] }
  0x7e   :  { %v135_v27 = vpop.xlane.xlu1 %134  ;;  %v41_v28 = vpop.xlane.xlu0 %40 }
  0x7f   :  { %v1160_v29 = vpop.eup %1159  ;;  %v137_v30 = vadd.f32 1e-10, %v135_v27  ;;  %v43_v31 = vadd.f32 1e-10, %v41_v28  ;;  %v102_v27 = vpop.permute.xlu2 %101  ;;  %v1123_v28 = vld [vmem:[%s1782_s5 + $0x10] sm:$0xff] }
  0x80   :  { %v1162_v32 = vpop.eup %1161  ;;  %v139_v33 = vmul.f32 %v1160_v29, %v136_v25  ;;  %vm144_vm2 = vweird.f32 %v1160_v29 }
  0x81   :  { %v45_v34 = vmul.f32 %v1162_v32, %v42_v26  ;;  %1163 = vrcp.f32 %v137_v30  ;;  %vm50_vm4 = vweird.f32 %v1162_v32  ;;  %vm1360_vm5 = vmor %vm143_vm1, %vm144_vm2  ;;  %v164_v50 = vand.u32 2147483648, %v137_v30  ;;  %v1128_v26 = vld [vmem:[%s1782_s5 + $0x38] sm:$0xff] }
  0x82   :  { %v140_v35 = vsub.f32 1.0, %v139_v33  ;;  %1165 = vrcp.f32 %v43_v31  ;;  %vm158_vm6 = vweird.f32 %v137_v30  ;;  %v162_v52 = vand.u32 2147483647, %v137_v30  ;;  %vm1370_vm9 = vmor %vm49_vm3, %vm50_vm4  ;;  %297 = vmatpush.bf16.msra.mxu2 %v1128_v26  ;;  %v1097_v33 = vld [vmem:[%s1783_s7 + $0xa8] sm:$0xf] }
  0x83   :  { %v46_v36 = vsub.f32 1.0, %v45_v34  ;;  %v68_v59 = vand.u32 2147483647, %v43_v31  ;;  %v70_v60 = vand.u32 2147483648, %v43_v31  ;;  %v165_v3 = vor.u32 1.1754944e-38, %v164_v50 }
  0x84   :  { %v141_v37 = vmul.f32 %v1160_v29, %v140_v35  ;;  %vm163_vm12 = vcmp.eq.f32.partialorder %v162_v52, 8.507059e+37  ;;  %vm64_vm14 = vweird.f32 %v43_v31  ;;  %v1151_v34 = vld [vmem:[%s1783_s7 + $0xb0] sm:$0xf0]  ;;  %v1150_v35 = vld [vmem:[%s1783_s7 + $0xac] sm:$0xf]  ;;  %vm658_vm2 = vcmp.ne.s32.totalorder %v1358_v42, 4294967196 }
  0x85   :  { %v47_v38 = vmul.f32 %v1162_v32, %v46_v36  ;;  %v71_v11 = vor.u32 1.1754944e-38, %v70_v60  ;;  %vm69_vm1 = vcmp.eq.f32.partialorder %v68_v59, 8.507059e+37  ;;  %v1093_v50 = vld [vmem:[%s1783_s7 + $0x98] sm:$0xf]  ;;  %v1081_v59 = vld [vmem:[%s1783_s7 + $0x80] sm:$0xf] }
  0x86   :  { %v142_v46 = vadd.f32 %v1160_v29, %v141_v37  ;;  %v1146_v60 = vld [vmem:[%s1783_s7 + $0x88] sm:$0xf0]  ;;  %v1061_v26 = vld [vmem:[%s1783_s7 + $0x60] sm:$0xf]  ;;  %vm678_vm4 = vcmask 7168  }
  0x87   :  { %v1164_v39 = vpop.eup %1163  ;;  %v48_v48 = vadd.f32 %v1162_v32, %v47_v38  ;;  %v1098_v38 = vor.u32 %v1151_v34, %v1097_v33  ;;  %v1051_v33 = vld [vmem:[%s1783_s7 + $0x54] sm:$0xf0]  ;;  %v1057_v34 = vld [vmem:[%s1783_s7 + $0x50] sm:$0xf] }
  0x88   :  { %v1166_v43 = vpop.eup %1165  ;;  %v154_v44 = vmul.f32 %v1164_v39, %v137_v30  ;;  %vm159_vm7 = vweird.f32 %v1164_v39  ;;  %v146_v61 = vsel %vm1360_vm5, %v1160_v29, %v142_v46  ;;  %v1122_v29 = vld [vmem:[%s1782_s5 + $0x8] sm:$0xff]  ;;  %v1121_v30 = vld [vmem:[%s1782_s5] sm:$0xff]  ;;  %v1148_v46 = vld [vmem:[%s1783_s7 + $0x98] sm:$0xf0] }
  0x89   :  { %v60_v47 = vmul.f32 %v1166_v43, %v43_v31  ;;  %v52_v63 = vsel %vm1370_vm9, %v1162_v32, %v48_v48  ;;  %vm65_vm10 = vweird.f32 %v1166_v43  ;;  %vm1380_vm11 = vmor %vm158_vm6, %vm159_vm7  ;;  %v151_v9 = vsel %vm1365_vm8, %v150_v56, %v146_v61  ;;  %v107_v31 = vpop.permute.xlu2 %106  ;;  %490 = vmatpush.bf16.msra.mxu3 %v1098_v38  ;;  %v1144_v56 = vld [vmem:[%s1783_s7 + $0x7c] sm:$0xf]  ;;  %v1037_v38 = vld [vmem:[%s1783_s7 + $0x30] sm:$0xf] }
  0x8a   :  { %v155_v51 = vsub.f32 1.0, %v154_v44  ;;  %v57_v10 = vsel %vm54_vm13, %v56_v6, %v52_v63  ;;  %vm66_vm15 = vmor %vm64_vm14, %vm65_vm10  ;;  %v152_v18 = vmul.f32 %v1294_v0, %v151_v9  ;;  %v1127_v0 = vld [vmem:[%s1782_s5 + $0x30] sm:$0xff]  ;;  %v1106_v44 = vor.u32 %v1152_v41, %v1105_v40 }
  0x8b   :  { %v61_v53 = vsub.f32 1.0, %v60_v47  ;;  %v58_v22 = vmul.f32 %v57_v10, %v1299_v1  ;;  %298 = vmatpush.bf16.msra.mxu2 %v1127_v0  ;;  %v1126_v1 = vld [vmem:[%s1782_s5 + $0x28] sm:$0xff]  ;;  %v1147_v47 = vld [vmem:[%s1783_s7 + $0x94] sm:$0xf]  ;;  %v1086_v48 = vor.u32 %v1148_v46, %v1085_v45  ;;  %v1078_v2 = vor.u32 %v1144_v56, %v1075_v58  ;;  %v1137_v45 = vld [vmem:[%s1783_s7 + $0x40] sm:$0xf0] }
  0x8c   :  { %v156_v57 = vmul.f32 %v1164_v39, %v155_v51  ;;  %v1149_v51 = vld [vmem:[%s1783_s7 + $0xa0] sm:$0xf0]  ;;  %528 = vmatpush.bf16.msrb.mxu1 %v1106_v44  ;;  %v1090_v52 = vor.u32 %v1147_v47, %v1087_v49  ;;  %v110_v9 = vmul.f32 %v107_v31, %v1339_v17  ;;  %v1142_v0 = vld [vmem:[%s1783_s7 + $0x68] sm:$0xf0]  ;;  %v1135_v40 = vld [vmem:[%s1783_s7 + $0x34] sm:$0xf] }
  0x8d   :  { %v62_v62 = vmul.f32 %v1166_v43, %v61_v53  ;;  %v1094_v53 = vor.u32 %v1149_v51, %v1093_v50  ;;  %491 = vmatpush.bf16.msra.mxu3 %v1086_v48  ;;  %v1138_v31 = vld [vmem:[%s1783_s7 + $0x4c] sm:$0xf]  ;;  %v1045_v44 = vld [vmem:[%s1783_s7 + $0x38] sm:$0xf]  ;;  %v1133_v49 = vld [vmem:[%s1783_s7 + $0x20] sm:$0xf0] }
  0x8e   :  { %v157_v7 = vadd.f32 %v1164_v39, %v156_v57  ;;  %v1046_v47 = vor.u32 %v1137_v45, %v1045_v44  ;;  %v1025_v48 = vld [vmem:[%s1783_s7 + $0x18] sm:$0xf]  ;;  %v1132_v50 = vld [vmem:[%s1783_s7 + $0x1c] sm:$0xf]  ;;  %v1130_v58 = vld [vmem:[%s1783_s7 + $0x8] sm:$0xf0] }
  0x8f   :  { %v63_v8 = vadd.f32 %v1166_v43, %v62_v62  ;;  %299 = vmatpush.bf16.msra.mxu2 %v1126_v1  ;;  %v1074_v62 = vor.u32 %v1145_v55, %v1073_v54  ;;  %v1141_v1 = vld [vmem:[%s1783_s7 + $0x64] sm:$0xf]  ;;  %v1026_v51 = vor.u32 %v1133_v49, %v1025_v48  ;;  %v1134_v54 = vld [vmem:[%s1783_s7 + $0x28] sm:$0xf0] }
  0x90   :  { %v161_v12 = vsel %vm1380_vm11, %v1164_v39, %v157_v7  ;;  %v1099_v39 = vld [vmem:[%s1783_s7 + $0xb4] sm:$0xf0]  ;;  %529 = vmatpush.bf16.msrb.mxu1 %v1094_v53  ;;  %v1033_v53 = vld [vmem:[%s1783_s7 + $0x20] sm:$0xf] }
  0x91   :  { %v67_v13 = vsel %vm66_vm15, %v1166_v43, %v63_v8  ;;  %v166_v14 = vsel %vm163_vm12, %v165_v3, %v161_v12  ;;  %v198_v32 = vpop.permute.xlu2 %197  ;;  %v1102_v43 = vor.u32 %v1150_v35, %v1099_v39  ;;  %v114_v57 = vpop.permute.xlu0 %113  ;;  %v1082_v3 = vor.u32 %v1146_v60, %v1081_v59  ;;  %492 = vmatpush.bf16.msra.mxu3 %v1074_v62  ;;  %v1140_v35 = vld [vmem:[%s1783_s7 + $0x58] sm:$0xf0]  ;;  %v1129_v59 = vld [vmem:[%s1783_s7 + $0x4] sm:$0xf]  ;;  %v1021_v62 = vld [vmem:[%s1783_s7 + $0x8] sm:$0xf] }
  0x92   :  { %v72_v15 = vsel %vm69_vm1, %v71_v11, %v67_v13  ;;  %v167_v19 = vmul.f32 %v1308_v4, %v166_v14  ;;  %v1125_v4 = vld [vmem:[%s1782_s5 + $0x20] sm:$0xff]  ;;  %v109_v8 = vmul.f32 %v102_v27, %v1334_v16  ;;  %v1136_v39 = vld [vmem:[%s1783_s7 + $0x38] sm:$0xf0]  ;;  %v1034_v56 = vor.u32 %v1134_v54, %v1033_v53 }
  0x93   :  { %v73_v23 = vmul.f32 %v72_v15, %v1313_v5  ;;  %300 = vmatpush.bf16.msra.mxu2 %v1125_v4  ;;  %v1124_v5 = vld [vmem:[%s1782_s5 + $0x18] sm:$0xff]  ;;  %509 = vmatpush.bf16.msrb.mxu0 %v1102_v43  ;;  %v1069_v4 = vld [vmem:[%s1783_s7 + $0x68] sm:$0xf]  ;;  %v1038_v41 = vor.u32 %v1136_v39, %v1037_v38  ;;  %v1039_v43 = vld [vmem:[%s1783_s7 + $0x3c] sm:$0xf0] }
  0x94   :  { %v171_v24 = vpack.c.bf16 %v167_v19, %v152_v18  ;;  %530 = vmatpush.bf16.msrb.mxu1 %v1082_v3  ;;  %v1042_v46 = vor.u32 %v1135_v40, %v1039_v43  ;;  %v552_v38 = vld [vmem:[%s1780_s3 + $0x8] sm:$0xff] }
  0x95   :  { %v76_v25 = vpack.c.bf16 %v73_v23, %v58_v22  ;;  %vm659_vm6 = vcmp.ne.s32.totalorder %v552_v38, 4294967196 }
  0x96   :  { %976 = vmatmul.msk.bf16.vlgmr.msra.gmra.mxu1 %vm35_vm0, %v171_v24  ;;  %v119_v61 = vpop.permute.xlu1 %118  ;;  %v205_v24 = vmul.f32 %v1346_v20, %v198_v32  ;;  %v1063_v20 = vld [vmem:[%s1783_s7 + $0x6c] sm:$0xf0] }
  0x97   :  { %971 = vmatmul.msk.bf16.vlgmr.msra.gmra.mxu0 %vm35_vm0, %v76_v25  ;;  %301 = vmatpush.bf16.msra.mxu2 %v1124_v5  ;;  %v1143_v5 = vld [vmem:[%s1783_s7 + $0x70] sm:$0xf0]  ;;  %v1066_v27 = vor.u32 %v1141_v1, %v1063_v20 }
  0x98   :  { %510 = vmatpush.bf16.msrb.mxu0 %v1090_v52  ;;  %v1027_v52 = vld [vmem:[%s1783_s7 + $0x24] sm:$0xf0] }
  0x99   :  { %v203_v36 = vpop.permute.xlu2 %202  ;;  %v1030_v55 = vor.u32 %v1132_v50, %v1027_v52 }
  0x9a   :  { %v206_v22 = vmul.f32 %v1351_v21, %v203_v36  ;;  %v1062_v21 = vor.u32 %v1142_v0, %v1061_v26  ;;  %v1054_v36 = vor.u32 %v1138_v31, %v1051_v33  ;;  %v553_v31 = vld [vmem:[%s1780_s3 + $0x10] sm:$0xff] }
  0x9b   :  { %302 = vmatpush.bf16.msra.mxu2 %v1123_v28  ;;  %v1070_v28 = vor.u32 %v1143_v5, %v1069_v4  ;;  %vm660_vm3 = vcmp.ne.s32.totalorder %v553_v31, 4294967196 }
  0x9c   :  { %511 = vmatpush.bf16.msrb.mxu0 %v1078_v2  ;;  %493 = vmatpush.bf16.msra.mxu3 %v1062_v21 }
  0x9d   :  { %531 = vmatpush.bf16.msrb.mxu1 %v1070_v28 }
  0x9f   :  { %303 = vmatpush.bf16.msra.mxu2 %v1122_v29  ;;  %v1049_v29 = vld [vmem:[%s1783_s7 + $0x48] sm:$0xf] }
  0xa0   :  { %512 = vmatpush.bf16.msrb.mxu0 %v1066_v27 }
  0xa1   :  { %v210_v11 = vpop.permute.xlu2 %209 }
  0xa3   :  { %304 = vmatpush.bf16.msra.mxu2 %v1121_v30  ;;  %v1139_v30 = vld [vmem:[%s1783_s7 + $0x50] sm:$0xf0] }
  0xa4   :  { %v1050_v32 = vor.u32 %v1139_v30, %v1049_v29  ;;  %513 = vmatpush.bf16.msrb.mxu0 %v1054_v36 }
  0xa6   :  { %494 = vmatpush.bf16.msra.mxu3 %v1050_v32  ;;  %v1240_v32 = vmov 0.0  }
  0xa7   :  { %v1583_v33 = vsel %vm658_vm2, 1.0, %v1240_v32  ;;  %v1606_v45 = vsel %vm659_vm6, 1.0, %v1240_v32 }
  0xa8   :  { %514 = vmatpush.bf16.msrb.mxu0 %v1042_v46  ;;  %v692_v39 = vsel %vm678_vm4, %v1583_v33, 0.0  ;;  %v693_v49 = vsel %vm678_vm4, %v1606_v45, 0.0 }
  0xa9   :  { %v215_v18 = vpop.permute.xlu2 %214 }
  0xaa   :  { %495 = vmatpush.bf16.msra.mxu3 %v1038_v41 }
  0xac   :  { %515 = vmatpush.bf16.msrb.mxu0 %v1030_v55 }
  0xae   :  { %496 = vmatpush.bf16.msra.mxu3 %v1026_v51  ;;  %v694_v51 = vadd.f32 %v693_v49, %v692_v39 }
 0x113   :  { %v185_v6 = vpop.f32.mrf.mxu1 }
 0x114   :  { %v90_v37 = vpop.f32.mrf.mxu0  ;;  %v217_v23 = vmul.f32 %v210_v11, %v185_v6 }
 0x115   :  { %v121_v63 = vmul.f32 %v114_v57, %v90_v37  ;;  %v1058_v37 = vor.u32 %v1140_v35, %v1057_v34  ;;  %v1013_v57 = vld [vmem:[%s1783_s7] sm:$0xf]  ;;  %v554_v34 = vld [vmem:[%s1780_s3 + $0x18] sm:$0xff] }
 0x116   :  { %v219_v25 = vadd.f32 %v217_v23, %v205_v24  ;;  %v1014_v60 = vor.u32 %v1130_v58, %v1013_v57  ;;  %vm661_vm5 = vcmp.ne.s32.totalorder %v554_v34, 4294967196 }
 0x117   :  { %v123_v12 = vadd.f32 %v121_v63, %v109_v8  ;;  %532 = vmatpush.bf16.msrb.mxu1 %v1058_v37  ;;  %v1131_v63 = vld [vmem:[%s1783_s7 + $0x10] sm:$0xf0]  ;;  %v1593_v37 = vsel %vm660_vm3, 1.0, %v1240_v32  ;;  %v1603_v44 = vsel %vm661_vm5, 1.0, %v1240_v32 }
 0x118   :  { %v1022_v3 = vor.u32 %v1131_v63, %v1021_v62  ;;  %497 = vmatpush.bf16.msra.mxu3 %v1014_v60  ;;  %v695_v48 = vsel %vm678_vm4, %v1593_v37, 0.0  ;;  %v697_v52 = vsel %vm678_vm4, %v1603_v44, 0.0 }
 0x119   :  { %v696_v53 = vadd.f32 %v695_v48, %v694_v51 }
 0x11b   :  { %v187_v15 = vpop.f32.mrf.mxu1  ;;  %533 = vmatpush.bf16.msrb.mxu1 %v1046_v47  ;;  %v1618_v58 = vadd.f32 %v697_v52, %v696_v53 }
 0x11c   :  { %v92_v7 = vpop.f32.mrf.mxu0  ;;  %v218_v19 = vmul.f32 %v215_v18, %v187_v15 }
 0x11d   :  { %v122_v10 = vmul.f32 %v119_v61, %v92_v7  ;;  %v1015_v61 = vld [vmem:[%s1783_s7 + $0xc] sm:$0xf0]  ;;  %v1158_v7 = vld [vmem:[%s1781_s6] ss:$0 sm:$0xff] }
 0x11e   :  { %v220_v16 = vadd.f32 %v218_v19, %v206_v22  ;;  %v1018_v2 = vor.u32 %v1129_v59, %v1015_v61 }
 0x11f   :  { %v124_v13 = vadd.f32 %v122_v10, %v110_v9  ;;  %534 = vmatpush.bf16.msrb.mxu1 %v1034_v56 }
 0x120   :  { %v228_v17 = vpack.c.bf16 %v220_v16, %v219_v25  ;;  %516 = vmatpush.bf16.msrb.mxu0 %v1018_v2  ;;  %v354_v16 = vld [vmem:[%s1784_s8] sm:$0x7] }
 0x121   :  { %v227_v14 = vpack.c.bf16 %v124_v13, %v123_v12  ;;  %v357_v26 = vperm.slane %v354_v16, 1  ;;  %v358_v0 = vperm.slane %v354_v16, 2  ;;  %v356_v1 = vperm.slane %v354_v16, 0 }
 0x123   :  { %305 = vmatmul.bf16.vlgmr.msra.gmra.mxu2 %v227_v14  ;;  %535 = vmatpush.bf16.msrb.mxu1 %v1022_v3 }
 0x133   :  { %310 = vmatmul.bf16.gmra.mxu2 %v228_v17 }
 0x1a6   :  { %v306_v6 = vpop.f32.mrf.mxu2 }
 0x1a7   :  { %v307_v8 = vadd.f32 %v1158_v7, %v306_v6 }
 0x1a9   :  { %1167 = vtanh.f32 %v307_v8 }
 0x1ae   :  { %v308_v9 = vpop.f32.mrf.mxu2 }
 0x1af   :  { %v309_v10 = vadd.f32 %v1158_v7, %v308_v9  ;;  %v1168_v11 = vpop.eup %1167 }
 0x1b1   :  { %1169 = vtanh.f32 %v309_v10  ;;  %v620_v10 = vpop.permute.xlu2 %619 }
 0x1b6   :  { %v311_v12 = vpop.f32.mrf.mxu2 }
 0x1b7   :  { %v1170_v13 = vpop.eup %1169  ;;  %v312_v15 = vadd.f32 %v1158_v7, %v311_v12 }
 0x1b8   :  { %v320_v14 = vpack.c.bf16 %v1170_v13, %v1168_v11 }
 0x1b9   :  { %1171 = vtanh.f32 %v312_v15 }
 0x1ba   :  { %498 = vmatmul.bf16.vlgmr.msra.gmra.mxu3 %v320_v14  ;;  %517 = vmatmul.bf16.vlgmr.msrb.gmra.mxu0 %v320_v14 }
 0x1bb   :  { %536 = vmatmul.bf16.vlgmr.msrb.gmra.mxu1 %v320_v14  ;;  %713 = vmatpush.bf16.xpose.msrb.mxu2 %v320_v14 }
 0x1be   :  { %v313_v18 = vpop.f32.mrf.mxu2 }
 0x1bf   :  { %v314_v19 = vadd.f32 %v1158_v7, %v313_v18  ;;  %v1172_v22 = vpop.eup %1171 }
 0x1c1   :  { %1173 = vtanh.f32 %v314_v19 }
 0x1c7   :  { %v1174_v23 = vpop.eup %1173 }
 0x1c8   :  { %v321_v24 = vpack.c.bf16 %v1174_v23, %v1172_v22 }
 0x1ca   :  { %503 = vmatmul.bf16.gmra.mxu3 %v321_v24  ;;  %522 = vmatmul.bf16.gmra.mxu0 %v321_v24 }
 0x1cb   :  { %541 = vmatmul.bf16.gmra.mxu1 %v321_v24  ;;  %832 = vmatpush.bf16.xpose.msrb.mxu3 %v321_v24 }
 0x237   :  { %v518_v25 = vpop.f32.mrf.mxu0 }
 0x238   :  { %v537_v17 = vpop.f32.mrf.mxu1  ;;  %v1572_v20 = vadd.f32 %v518_v25, %v357_v26 }
 0x239   :  { %v538_v4 = vadd.f32 %v537_v17, %v358_v0 }
 0x23b   :  { %1175 = vtanh.f32 %v538_v4 }
 0x23d   :  { %v499_v21 = vpop.f32.mrf.mxu3 }
 0x23e   :  { %v1574_v5 = vadd.f32 %v499_v21, %v356_v1 }
 0x23f   :  { %v520_v27 = vpop.f32.mrf.mxu0 }
 0x240   :  { %v539_v28 = vpop.f32.mrf.mxu1  ;;  %v555_v29 = vmax.f32 %v1574_v5, %v1572_v20  ;;  %v1588_v42 = vadd.f32 %v520_v27, %v357_v26 }
 0x241   :  { %v540_v30 = vadd.f32 %v539_v28, %v358_v0  ;;  %v1176_v40 = vpop.eup %1175 }
 0x242   :  { %556 = vmax.xlane.f32.xlu1 %v555_v29 }
 0x243   :  { %1177 = vtanh.f32 %v540_v30 }
 0x245   :  { %v501_v35 = vpop.f32.mrf.mxu3 }
 0x246   :  { %v1590_v36 = vadd.f32 %v501_v35, %v356_v1 }
 0x247   :  { %v523_v47 = vpop.f32.mrf.mxu0 }
 0x248   :  { %v542_v41 = vpop.f32.mrf.mxu1  ;;  %v558_v43 = vmax.f32 %v1590_v36, %v1588_v42  ;;  %v1614_v55 = vadd.f32 %v523_v47, %v357_v26 }
 0x249   :  { %v1178_v46 = vpop.eup %1177  ;;  %v543_v56 = vadd.f32 %v542_v41, %v358_v0 }
 0x24a   :  { %559 = vmax.xlane.f32.xlu2 %v558_v43  ;;  %v705_v50 = vpack.c.bf16 %v1178_v46, %v1176_v40 }
 0x24b   :  { %1179 = vtanh.f32 %v543_v56 }
 0x24c   :  { %714 = vmatmul.bf16.vlgmr.msrb.gmra.mxu2 %v705_v50 }
 0x24d   :  { %v504_v54 = vpop.f32.mrf.mxu3 }
 0x24e   :  { %v1616_v57 = vadd.f32 %v504_v54, %v356_v1 }
 0x24f   :  { %v525_v62 = vpop.f32.mrf.mxu0 }
 0x250   :  { %v544_v59 = vpop.f32.mrf.mxu1  ;;  %v561_v60 = vmax.f32 %v1616_v57, %v1614_v55  ;;  %v1622_v2 = vadd.f32 %v525_v62, %v357_v26  ;;  %v615_v26 = vlaneseq }
 0x251   :  { %v545_v61 = vadd.f32 %v544_v59, %v358_v0  ;;  %v1180_v6 = vpop.eup %1179 }
 0x252   :  { %562 = vmax.xlane.f32.xlu0 %v561_v60  ;;  %v1646_v27 = vand.u32 127, %v615_v26 }
 0x253   :  { %1181 = vtanh.f32 %v545_v61 }
 0x254   :  { %vm630_vm7 = vcmp.eq.s32.totalorder %v1646_v27, %v620_v10 }
 0x255   :  { %v506_v63 = vpop.f32.mrf.mxu3  ;;  %v638_v41 = vsel %vm630_vm7, %v1574_v5, 0.0 }
 0x256   :  { %v1624_v3 = vadd.f32 %v506_v63, %v356_v1 }
 0x258   :  { %v564_v7 = vmax.f32 %v1624_v3, %v1622_v2 }
 0x259   :  { %v1182_v8 = vpop.eup %1181 }
 0x25a   :  { %565 = vmax.xlane.f32.xlu1 %v564_v7  ;;  %v824_v9 = vpack.c.bf16 %v1182_v8, %v1180_v6 }
 0x25c   :  { %833 = vmatmul.bf16.vlgmr.msrb.gmra.mxu3 %v824_v9 }
 0x262   :  { %628 = vperm.xlu2 %1155, %v554_v34   ;;  %v1649_v34 = vadd.s32 128, %v1646_v27 }
 0x264   :  { %vm631_vm8 = vcmp.eq.s32.totalorder %v1649_v34, %v620_v10 }
 0x265   :  { %v639_v51 = vsel %vm631_vm8, %v1572_v20, 0.0 }
 0x266   :  { %625 = vperm.xlu0 %1156, %v553_v31   ;;  %v646_v53 = vadd.f32 %v639_v51, %v638_v41 }
 0x273   :  { %622 = vperm.xlu1 %1157, %v552_v38  }
 0x2b5   :  { %v1628_v11 = vpop.xlane.xlu1 %556 }
 0x2b6   :  { %v567_v12 = vsub.f32 %v1574_v5, %v1628_v11  ;;  %v568_v13 = vsub.f32 %v1572_v20, %v1628_v11 }
 0x2b8   :  { %v575_v14 = vmul.f32 1.442695, %v567_v12  ;;  %v577_v15 = vmul.f32 1.442695, %v568_v13 }
 0x2ba   :  { %1183 = vpow2.f32 %v575_v14 }
 0x2bb   :  { %1185 = vpow2.f32 %v577_v15  ;;  %v1672_v15 = vld [vmem:[%s1785_s4] sm:$0xff] }
 0x2bc   :  { %vm786_vm13 = vcmp.ne.s32.totalorder %v1672_v15, 4294967196 }
 0x2bd   :  { %v1634_v18 = vpop.xlane.xlu2 %559 }
 0x2be   :  { %v569_v19 = vsub.f32 %v1590_v36, %v1634_v18  ;;  %v570_v22 = vsub.f32 %v1588_v42, %v1634_v18 }
 0x2c0   :  { %v1184_v23 = vpop.eup %1183  ;;  %v579_v24 = vmul.f32 1.442695, %v569_v19  ;;  %v581_v16 = vmul.f32 1.442695, %v570_v22 }
 0x2c1   :  { %v1186_v25 = vpop.eup %1185 }
 0x2c2   :  { %1187 = vpow2.f32 %v579_v24  ;;  %v591_v17 = vadd.f32 %v1186_v25, %v1184_v23  ;;  %v1680_v25 = vsel %vm786_vm13, 1.0, %v1240_v32 }
 0x2c3   :  { %1189 = vpow2.f32 %v581_v16 }
 0x2c4   :  { %592 = vadd.xlane.f32.xlu1 %v591_v17 }
 0x2c5   :  { %v1640_v0 = vpop.xlane.xlu0 %562  ;;  %v629_v50 = vpop.permute.xlu2 %628 }
 0x2c6   :  { %v571_v1 = vsub.f32 %v1616_v57, %v1640_v0  ;;  %v572_v21 = vsub.f32 %v1614_v55, %v1640_v0  ;;  %vm636_vm9 = vcmp.eq.s32.totalorder %v1646_v27, %v629_v50  ;;  %vm637_vm10 = vcmp.eq.s32.totalorder %v1649_v34, %v629_v50 }
 0x2c7   :  { %v644_v54 = vsel %vm636_vm9, %v1624_v3, 0.0  ;;  %v645_v56 = vsel %vm637_vm10, %v1622_v2, 0.0 }
 0x2c8   :  { %v1188_v4 = vpop.eup %1187  ;;  %v583_v28 = vmul.f32 1.442695, %v571_v1  ;;  %v585_v29 = vmul.f32 1.442695, %v572_v21  ;;  %v655_v63 = vadd.f32 %v645_v56, %v644_v54 }
 0x2c9   :  { %v1190_v30 = vpop.eup %1189 }
 0x2ca   :  { %1191 = vpow2.f32 %v583_v28  ;;  %v594_v31 = vadd.f32 %v1190_v30, %v1188_v4  ;;  %v1685_v28 = vld [vmem:[%s1785_s4 + $0x10] sm:$0xff] }
 0x2cb   :  { %1193 = vpow2.f32 %v585_v29  ;;  %vm906_vm2 = vcmp.ne.s32.totalorder %v1685_v28, 4294967196 }
 0x2cc   :  { %595 = vadd.xlane.f32.xlu0 %v594_v31 }
 0x2cd   :  { %v1651_v35 = vpop.xlane.xlu1 %565 }
 0x2ce   :  { %v573_v38 = vsub.f32 %v1624_v3, %v1651_v35  ;;  %v574_v39 = vsub.f32 %v1622_v2, %v1651_v35 }
 0x2cf   :  { %v715_v40 = vpop.f32.mrf.mxu2 }
 0x2d0   :  { %v1192_v43 = vpop.eup %1191  ;;  %v587_v46 = vmul.f32 1.442695, %v573_v38  ;;  %v589_v47 = vmul.f32 1.442695, %v574_v39  ;;  %v1111_v48 = vmul.f32 -1.442695, %v715_v40 }
 0x2d1   :  { %v1194_v49 = vpop.eup %1193  ;;  %v1694_v39 = vsel %vm906_vm2, 1.0, %v1240_v32 }
 0x2d2   :  { %1195 = vpow2.f32 %v587_v46  ;;  %v597_v52 = vadd.f32 %v1194_v49, %v1192_v43  ;;  %v930_v49 = vsel %vm35_vm0, %v1694_v39, 0.0 }
 0x2d3   :  { %1197 = vpow2.f32 %v589_v47 }
 0x2d4   :  { %1199 = vpow2.f32 %v1111_v48  ;;  %598 = vadd.xlane.f32.xlu2 %v597_v52  ;;  %647 = vadd.xlane.f32.xlu0 %v646_v53  ;;  %v1708_v52 = vld [vmem:[%s1785_s4 + $0x8] sm:$0xff] }
 0x2d5   :  { %vm787_vm9 = vcmp.ne.s32.totalorder %v1708_v52, 4294967196 }
 0x2d7   :  { %v717_v5 = vpop.f32.mrf.mxu2 }
 0x2d8   :  { %v1196_v59 = vpop.eup %1195  ;;  %v1112_v60 = vmul.f32 -1.442695, %v717_v5  ;;  %v626_v20 = vpop.permute.xlu0 %625 }
 0x2d9   :  { %v1198_v61 = vpop.eup %1197  ;;  %vm634_vm11 = vcmp.eq.s32.totalorder %v1646_v27, %v626_v20  ;;  %vm635_vm12 = vcmp.eq.s32.totalorder %v1649_v34, %v626_v20 }
 0x2da   :  { %v1200_v62 = vpop.eup %1199  ;;  %1201 = vpow2.f32 %v1112_v60  ;;  %v600_v6 = vadd.f32 %v1198_v61, %v1196_v59  ;;  %v642_v3 = vsel %vm634_vm11, %v1616_v57, 0.0  ;;  %v643_v2 = vsel %vm635_vm12, %v1614_v55, 0.0 }
 0x2db   :  { %v726_v7 = vadd.f32 1.0, %v1200_v62  ;;  %v652_v13 = vadd.f32 %v643_v2, %v642_v3  ;;  %v1713_v61 = vsel %vm787_vm9, 1.0, %v1240_v32 }
 0x2dc   :  { %656 = vadd.xlane.f32.xlu0 %v655_v63  ;;  %601 = vadd.xlane.f32.xlu1 %v600_v6  ;;  %v813_v62 = vsel %vm35_vm0, %v1713_v61, 0.0 }
 0x2dd   :  { %1203 = vrcp.f32 %v726_v7  ;;  %v737_v55 = vand.u32 2147483647, %v726_v7  ;;  %v739_v17 = vand.u32 2147483648, %v726_v7  ;;  %vm733_vm3 = vweird.f32 %v726_v7 }
 0x2df   :  { %v834_v8 = vpop.f32.mrf.mxu3  ;;  %vm738_vm6 = vcmp.eq.f32.partialorder %v737_v55, 8.507059e+37 }
 0x2e0   :  { %v1202_v9 = vpop.eup %1201  ;;  %v1115_v10 = vmul.f32 -1.442695, %v834_v8 }
 0x2e1   :  { %v727_v12 = vadd.f32 1.0, %v1202_v9 }
 0x2e2   :  { %1205 = vpow2.f32 %v1115_v10 }
 0x2e3   :  { %v1204_v14 = vpop.eup %1203  ;;  %1207 = vrcp.f32 %v727_v12  ;;  %v752_v43 = vand.u32 2147483647, %v727_v12  ;;  %v754_v46 = vand.u32 2147483648, %v727_v12  ;;  %vm748_vm8 = vweird.f32 %v727_v12 }
 0x2e4   :  { %v729_v19 = vmul.f32 %v1204_v14, %v726_v7  ;;  %653 = vadd.xlane.f32.xlu1 %v652_v13  ;;  %vm734_vm1 = vweird.f32 %v1204_v14  ;;  %814 = vadd.xlane.f32.xlu0 %v813_v62 }
 0x2e5   :  { %v623_v22 = vpop.permute.xlu1 %622  ;;  %vm735_vm5 = vmor %vm733_vm3, %vm734_vm1  ;;  %vm753_vm11 = vcmp.eq.f32.partialorder %v752_v43, 8.507059e+37  ;;  %v755_v56 = vor.u32 1.1754944e-38, %v754_v46 }
 0x2e6   :  { %v730_v57 = vsub.f32 1.0, %v729_v19  ;;  %vm632_vm14 = vcmp.eq.s32.totalorder %v1646_v27, %v623_v22  ;;  %vm633_vm15 = vcmp.eq.s32.totalorder %v1649_v34, %v623_v22  ;;  %v740_v34 = vor.u32 1.1754944e-38, %v739_v17 }
 0x2e7   :  { %v836_v23 = vpop.f32.mrf.mxu3  ;;  %v640_v24 = vsel %vm632_vm14, %v1590_v36, 0.0  ;;  %v641_v16 = vsel %vm633_vm15, %v1588_v42, 0.0  ;;  %v810_v42 = vsel %vm35_vm0, %v1680_v25, 0.0 }
 0x2e8   :  { %v1206_v26 = vpop.eup %1205  ;;  %v731_v1 = vmul.f32 %v1204_v14, %v730_v57  ;;  %v1116_v21 = vmul.f32 -1.442695, %v836_v23  ;;  %v649_v4 = vadd.f32 %v641_v16, %v640_v24 }
 0x2e9   :  { %v1208_v29 = vpop.eup %1207  ;;  %v1687_v30 = vadd.f32 1.0, %v1206_v26 }
 0x2ea   :  { %v744_v36 = vmul.f32 %v1208_v29, %v727_v12  ;;  %1209 = vpow2.f32 %v1116_v21  ;;  %650 = vadd.xlane.f32.xlu2 %v649_v4  ;;  %v732_v31 = vadd.f32 %v1204_v14, %v731_v1  ;;  %vm749_vm7 = vweird.f32 %v1208_v29 }
 0x2eb   :  { %1211 = vrcp.f32 %v1687_v30  ;;  %vm750_vm10 = vmor %vm748_vm8, %vm749_vm7  ;;  %v856_v3 = vand.u32 2147483647, %v1687_v30  ;;  %v858_v2 = vand.u32 2147483648, %v1687_v30  ;;  %vm852_vm13 = vweird.f32 %v1687_v30 }
 0x2ec   :  { %v745_v38 = vsub.f32 1.0, %v744_v36  ;;  %811 = vadd.xlane.f32.xlu1 %v810_v42  ;;  %v736_v40 = vsel %vm735_vm5, %v1204_v14, %v732_v31  ;;  %vm783_vm7 = vcmp.eq.s32.totalorder %v1708_v52, 1  ;;  %vm902_vm8 = vcmp.eq.s32.totalorder %v1685_v28, 1 }
 0x2ed   :  { %v1696_v41 = vsel %vm738_vm6, %v740_v34, %v736_v40  ;;  %v859_v22 = vor.u32 1.1754944e-38, %v858_v2  ;;  %vm857_vm15 = vcmp.eq.f32.partialorder %v856_v3, 8.507059e+37  ;;  %vm782_vm6 = vcmp.eq.s32.totalorder %v1672_v15, 1 }
 0x2ee   :  { %v746_v47 = vmul.f32 %v1208_v29, %v745_v38  ;;  %v1699_v48 = vsub.f32 1.0, %v1696_v41 }
 0x2f0   :  { %v1210_v50 = vpop.eup %1209  ;;  %v764_v51 = vsub.f32 %v1696_v41, %v1699_v48  ;;  %v747_v53 = vadd.f32 %v1208_v29, %v746_v47 }
 0x2f1   :  { %v1212_v5 = vpop.eup %1211  ;;  %v846_v54 = vadd.f32 1.0, %v1210_v50 }
 0x2f2   :  { %v848_v59 = vmul.f32 %v1212_v5, %v1687_v30  ;;  %931 = vadd.xlane.f32.xlu2 %v930_v49  ;;  %v766_v60 = vand.u32 2147483647, %v764_v51  ;;  %v751_v20 = vsel %vm750_vm10, %v1208_v29, %v747_v53  ;;  %vm853_vm12 = vweird.f32 %v1212_v5 }
 0x2f3   :  { %1213 = vrcp.f32 %v846_v54  ;;  %v1717_v63 = vsel %vm753_vm11, %v755_v56, %v751_v20  ;;  %vm854_vm14 = vmor %vm852_vm13, %vm853_vm12  ;;  %v871_v1 = vand.u32 2147483647, %v846_v54  ;;  %v873_v21 = vand.u32 2147483648, %v846_v54 }
 0x2f4   :  { %v849_v6 = vsub.f32 1.0, %v848_v59  ;;  %v768_v7 = vsub.f32 0.0, %v766_v60  ;;  %v1720_v8 = vsub.f32 1.0, %v1717_v63  ;;  %vm867_vm2 = vweird.f32 %v846_v54 }
 0x2f5   :  { %v874_v34 = vor.u32 1.1754944e-38, %v873_v21  ;;  %vm872_vm5 = vcmp.eq.f32.partialorder %v871_v1, 8.507059e+37  ;;  %v784_v20 = vsel %vm782_vm6, %v1696_v41, %v1699_v48  ;;  %vm959_vm11 = vcmp.eq.s32.totalorder %v1646_v27, 2 }
 0x2f6   :  { %v850_v9 = vmul.f32 %v1212_v5, %v849_v6  ;;  %v770_v10 = vmul.f32 1.442695, %v768_v7  ;;  %v765_v12 = vsub.f32 %v1717_v63, %v1720_v8  ;;  %v763_v15 = vmax.f32 %v1720_v8, %v1717_v63 }
 0x2f7   :  { %vm962_vm12 = vcmp.eq.s32.totalorder %v1646_v27, 3  ;;  %vm965_vm13 = vcmask 24576  }
 0x2f8   :  { %1215 = vpow2.f32 %v770_v10  ;;  %v767_v13 = vand.u32 2147483647, %v765_v12  ;;  %v851_v14 = vadd.f32 %v1212_v5, %v850_v9 }
 0x2f9   :  { %v1214_v19 = vpop.eup %1213 }
 0x2fa   :  { %v863_v57 = vmul.f32 %v1214_v19, %v846_v54  ;;  %v769_v55 = vsub.f32 0.0, %v767_v13  ;;  %v855_v23 = vsel %vm854_vm14, %v1212_v5, %v851_v14  ;;  %vm868_vm1 = vweird.f32 %v1214_v19 }
 0x2fb   :  { %v1727_v24 = vsel %vm857_vm15, %v859_v22, %v855_v23  ;;  %vm869_vm3 = vmor %vm867_vm2, %vm868_vm1  ;;  %v762_v5 = vmax.f32 %v1699_v48, %v1696_v41  ;;  %v785_v41 = vsel %vm783_vm7, %v1717_v63, %v1720_v8  ;;  %v1118_v63 = vld [vmem:[%s1785_s4 + $0x18] sm:$0xff] }
 0x2fc   :  { %v864_v16 = vsub.f32 1.0, %v863_v57  ;;  %v772_v17 = vmul.f32 1.442695, %v769_v55  ;;  %v880_v26 = vsub.f32 1.0, %v1727_v24  ;;  %vm903_vm9 = vcmp.eq.s32.totalorder %v1118_v63, 1 }
 0x2fd   :  { %vm907_vm10 = vcmp.ne.s32.totalorder %v1118_v63, 4294967196 }
 0x2fe   :  { %v1216_v4 = vpop.eup %1215  ;;  %v865_v29 = vmul.f32 %v1214_v19, %v864_v16  ;;  %1217 = vpow2.f32 %v772_v17  ;;  %v884_v30 = vsub.f32 %v1727_v24, %v880_v26  ;;  %v882_v57 = vmax.f32 %v880_v26, %v1727_v24 }
 0x2ff   :  { %v774_v42 = vadd.f32 1.0, %v1216_v4  ;;  %v904_v16 = vsel %vm902_vm8, %v1727_v24, %v880_v26 }
 0x300   :  { %v886_v36 = vand.u32 2147483647, %v884_v30  ;;  %v866_v31 = vadd.f32 %v1214_v19, %v865_v29  ;;  %v1120_v30 = vsel %vm907_vm10, 1.0, %v1240_v32 }
 0x301   :  { %1219 = vlog2.f32 %v774_v42 }
 0x302   :  { %v888_v38 = vsub.f32 0.0, %v886_v36  ;;  %v870_v40 = vsel %vm869_vm3, %v1214_v19, %v866_v31  ;;  %v699_v36 = vrot.slane %v1618_v58, 4 }
 0x303   :  { %v875_v43 = vsel %vm872_vm5, %v874_v34, %v870_v40 }
 0x304   :  { %v1218_v46 = vpop.eup %1217  ;;  %v890_v47 = vmul.f32 1.442695, %v888_v38  ;;  %v881_v49 = vsub.f32 1.0, %v875_v43  ;;  %v933_v38 = vsel %vm35_vm0, %v1120_v30, 0.0 }
 0x305   :  { %v775_v50 = vadd.f32 1.0, %v1218_v46 }
 0x306   :  { %1221 = vpow2.f32 %v890_v47  ;;  %v885_v51 = vsub.f32 %v875_v43, %v881_v49  ;;  %v883_v1 = vmax.f32 %v881_v49, %v875_v43  ;;  %v905_v29 = vsel %vm903_vm9, %v875_v43, %v881_v49 }
 0x307   :  { %v1220_v53 = vpop.eup %1219  ;;  %1223 = vlog2.f32 %v775_v50 }
 0x308   :  { %v777_v54 = vmul.f32 0.6931472, %v1220_v53  ;;  %v887_v56 = vand.u32 2147483647, %v885_v51 }
 0x30a   :  { %v780_v59 = vadd.f32 %v777_v54, %v762_v5  ;;  %v889_v60 = vsub.f32 0.0, %v887_v56 }
 0x30c   :  { %v1222_v62 = vpop.eup %1221  ;;  %v792_v6 = vsub.f32 %v780_v59, %v784_v20  ;;  %v892_v7 = vmul.f32 1.442695, %v889_v60 }
 0x30d   :  { %v1224_v3 = vpop.eup %1223  ;;  %v894_v2 = vadd.f32 1.0, %v1222_v62 }
 0x30e   :  { %v794_v9 = vmul.f32 %v1680_v25, %v792_v6  ;;  %v779_v10 = vmul.f32 0.6931472, %v1224_v3  ;;  %1225 = vpow2.f32 %v892_v7 }
 0x30f   :  { %1227 = vlog2.f32 %v894_v2 }
 0x310   :  { %v796_v12 = vsel %vm35_vm0, %v794_v9, 0.0  ;;  %v781_v13 = vadd.f32 %v779_v10, %v763_v15 }
 0x311   :  { %797 = vadd.xlane.f32.xlu2 %v796_v12 }
 0x312   :  { %v793_v48 = vsub.f32 %v781_v13, %v785_v41 }
 0x314   :  { %v1226_v14 = vpop.eup %1225  ;;  %v795_v52 = vmul.f32 %v1713_v61, %v793_v48 }
 0x315   :  { %v1228_v19 = vpop.eup %1227  ;;  %v895_v22 = vadd.f32 1.0, %v1226_v14 }
 0x316   :  { %v799_v25 = vsel %vm35_vm0, %v795_v52, 0.0  ;;  %v897_v55 = vmul.f32 0.6931472, %v1228_v19 }
 0x317   :  { %800 = vadd.xlane.f32.xlu1 %v799_v25  ;;  %1229 = vlog2.f32 %v895_v22 }
 0x318   :  { %v900_v23 = vadd.f32 %v897_v55, %v882_v57 }
 0x31a   :  { %v912_v17 = vsub.f32 %v900_v23, %v904_v16 }
 0x31c   :  { %v914_v61 = vmul.f32 %v1694_v39, %v912_v17  ;;  %v700_v39 = vadd.f32 %v699_v36, %v1618_v58 }
 0x31d   :  { %v1230_v8 = vpop.eup %1229 }
 0x31e   :  { %v916_v28 = vsel %vm35_vm0, %v914_v61, 0.0  ;;  %v899_v21 = vmul.f32 0.6931472, %v1230_v8  ;;  %v701_v31 = vrot.slane %v700_v39, 2 }
 0x31f   :  { %917 = vadd.xlane.f32.xlu0 %v916_v28  ;;  %934 = vadd.xlane.f32.xlu1 %v933_v38 }
 0x320   :  { %v901_v4 = vadd.f32 %v899_v21, %v883_v1  ;;  %v702_v34 = vadd.f32 %v701_v31, %v700_v39 }
 0x322   :  { %v913_v24 = vsub.f32 %v901_v4, %v905_v29  ;;  %v703_v40 = vrot.slane %v702_v34, 1 }
 0x324   :  { %v915_v26 = vmul.f32 %v1120_v30, %v913_v24  ;;  %v704_v46 = vadd.f32 %v703_v40, %v702_v34 }
 0x326   :  { %v919_v42 = vsel %vm35_vm0, %v915_v26, 0.0  ;;  %vm951_vm0 = vcmp.eq.s32.totalorder %v1646_v27, 1 }
 0x327   :  { %920 = vadd.xlane.f32.xlu2 %v919_v42 }
 0x337   :  { %v593_v43 = vpop.xlane.xlu1 %592 }
 0x338   :  { %1231 = vlog2.f32 %v593_v43 }
 0x33e   :  { %v1232_v50 = vpop.eup %1231 }
 0x33f   :  { %954 = vperm.xlu2 %1155, %v704_v46   ;;  %v596_v47 = vpop.xlane.xlu0 %595  ;;  %v604_v58 = vmul.f32 0.6931472, %v1232_v50 }
 0x341   :  { %v611_v20 = vadd.f32 %v604_v58, %v1628_v11 }
 0x347   :  { %v599_v32 = vpop.xlane.xlu2 %598  ;;  %v648_v53 = vpop.xlane.xlu0 %647 }
 0x348   :  { %1233 = vlog2.f32 %v599_v32  ;;  %v670_v6 = vsub.f32 %v611_v20, %v648_v53 }
 0x349   :  { %1235 = vlog2.f32 %v596_v47 }
 0x34a   :  { %v674_v12 = vmul.f32 %v1583_v33, %v670_v6 }
 0x34c   :  { %v679_v11 = vsel %vm678_vm4, %v674_v12, 0.0 }
 0x34e   :  { %v1234_v51 = vpop.eup %1233 }
 0x34f   :  { %v602_v49 = vpop.xlane.xlu1 %601  ;;  %v1236_v5 = vpop.eup %1235  ;;  %v608_v56 = vmul.f32 0.6931472, %v1234_v51 }
 0x350   :  { %1237 = vlog2.f32 %v602_v49  ;;  %v606_v60 = vmul.f32 0.6931472, %v1236_v5  ;;  %v657_v15 = vpop.xlane.xlu0 %656 }
 0x351   :  { %v613_v3 = vadd.f32 %v608_v56, %v1640_v0 }
 0x352   :  { %v612_v9 = vadd.f32 %v606_v60, %v1634_v18 }
 0x356   :  { %v1238_v54 = vpop.eup %1237 }
 0x357   :  { %v610_v59 = vmul.f32 0.6931472, %v1238_v54  ;;  %v654_v62 = vpop.xlane.xlu1 %653 }
 0x358   :  { %v672_v2 = vsub.f32 %v613_v3, %v654_v62 }
 0x359   :  { %v614_v7 = vadd.f32 %v610_v59, %v1651_v35 }
 0x35a   :  { %v676_v48 = vmul.f32 %v1593_v37, %v672_v2 }
 0x35b   :  { %v673_v13 = vsub.f32 %v614_v7, %v657_v15 }
 0x35c   :  { %v682_v19 = vsel %vm678_vm4, %v676_v48, 0.0 }
 0x35d   :  { %v651_v10 = vpop.xlane.xlu2 %650  ;;  %v677_v52 = vmul.f32 %v1603_v44, %v673_v13  ;;  %v815_v44 = vpop.xlane.xlu0 %814 }
 0x35e   :  { %v671_v41 = vsub.f32 %v612_v9, %v651_v10 }
 0x35f   :  { %v684_v22 = vsel %vm678_vm4, %v677_v52, 0.0  ;;  %v812_v17 = vpop.xlane.xlu1 %811 }
 0x360   :  { %v675_v14 = vmul.f32 %v1606_v45, %v671_v41  ;;  %v816_v4 = vadd.f32 %v815_v44, %v812_v17 }
 0x362   :  { %v680_v35 = vsel %vm678_vm4, %v675_v14, 0.0  ;;  %v817_v26 = vrot.slane %v816_v4, 4  ;;  %vm944_vm4 = vcmp.eq.s32.totalorder %v1646_v27, 0 }
 0x363   :  { %v681_v0 = vadd.f32 %v680_v35, %v679_v11 }
 0x364   :  { %v818_v31 = vadd.f32 %v817_v26, %v816_v4 }
 0x365   :  { %v683_v18 = vadd.f32 %v682_v19, %v681_v0  ;;  %v932_v45 = vpop.xlane.xlu2 %931 }
 0x366   :  { %v819_v46 = vrot.slane %v818_v31, 2 }
 0x367   :  { %v685_v25 = vadd.f32 %v684_v22, %v683_v18 }
 0x368   :  { %v820_v49 = vadd.f32 %v819_v46, %v818_v31 }
 0x369   :  { %v686_v33 = vrot.slane %v685_v25, 4 }
 0x36a   :  { %v821_v58 = vrot.slane %v820_v49, 1 }
 0x36b   :  { %v687_v57 = vadd.f32 %v686_v33, %v685_v25 }
 0x36c   :  { %v822_v59 = vadd.f32 %v821_v58, %v820_v49 }
 0x36d   :  { %v688_v55 = vrot.slane %v687_v57, 2 }
 0x36f   :  { %v689_v23 = vadd.f32 %v688_v55, %v687_v57 }
 0x371   :  { %v690_v37 = vrot.slane %v689_v23, 1 }
 0x373   :  { %v691_v16 = vadd.f32 %v690_v37, %v689_v23 }
 0x375   :  { %947 = vperm.xlu0 %1156, %v691_v16  }
 0x384   :  { %v798_v63 = vpop.xlane.xlu2 %797 }
 0x38a   :  { %v801_v61 = vpop.xlane.xlu1 %800 }
 0x38b   :  { %v802_v29 = vadd.f32 %v801_v61, %v798_v63 }
 0x38d   :  { %v803_v42 = vrot.slane %v802_v29, 4 }
 0x38f   :  { %v804_v34 = vadd.f32 %v803_v42, %v802_v29 }
 0x391   :  { %v805_v43 = vrot.slane %v804_v34, 2 }
 0x392   :  { %v918_v28 = vpop.xlane.xlu0 %917  ;;  %v935_v1 = vpop.xlane.xlu1 %934 }
 0x393   :  { %v936_v30 = vadd.f32 %v935_v1, %v932_v45  ;;  %v806_v50 = vadd.f32 %v805_v43, %v804_v34 }
 0x395   :  { %v937_v36 = vrot.slane %v936_v30, 4  ;;  %v807_v5 = vrot.slane %v806_v50, 1 }
 0x397   :  { %v938_v38 = vadd.f32 %v937_v36, %v936_v30  ;;  %v808_v60 = vadd.f32 %v807_v5, %v806_v50 }
 0x399   :  { %v939_v47 = vrot.slane %v938_v38, 2 }
 0x39a   :  { %v921_v8 = vpop.xlane.xlu2 %920 }
 0x39b   :  { %v922_v21 = vadd.f32 %v921_v8, %v918_v28  ;;  %v940_v51 = vadd.f32 %v939_v47, %v938_v38 }
 0x39d   :  { %v923_v24 = vrot.slane %v922_v21, 4  ;;  %v941_v54 = vrot.slane %v940_v51, 1 }
 0x39f   :  { %v924_v39 = vadd.f32 %v923_v24, %v922_v21  ;;  %v942_v20 = vadd.f32 %v941_v54, %v940_v51 }
 0x3a1   :  { %v925_v40 = vrot.slane %v924_v39, 2  ;;  %v943_v2 = vadd.f32 %v942_v20, %v822_v59 }
 0x3a2   :  { %v955_v62 = vpop.permute.xlu2 %954 }
 0x3a3   :  { %v926_v32 = vadd.f32 %v925_v40, %v924_v39  ;;  %v957_v3 = vsel %vm951_vm0, %v955_v62, 0.0  ;;  %v963_v13 = vsel %vm962_vm12, %v943_v2, 0.0 }
 0x3a5   :  { %v927_v53 = vrot.slane %v926_v32, 1 }
 0x3a7   :  { %v928_v56 = vadd.f32 %v927_v53, %v926_v32 }
 0x3a9   :  { %v929_v6 = vadd.f32 %v928_v56, %v808_v60 }
 0x3ab   :  { %v960_v10 = vsel %vm959_vm11, %v929_v6, 0.0 }
 0x3e7   :  { %v948_v7 = vpop.permute.xlu0 %947 }
 0x3e8   :  { %v950_v9 = vsel %vm944_vm4, %v948_v7, 0.0 }
 0x3e9   :  { %v958_v15 = vadd.f32 %v957_v3, %v950_v9 }
 0x3eb   :  { %v961_v12 = vadd.f32 %v960_v10, %v958_v15 }
 0x3ed   :  { %v964_v41 = vadd.f32 %v963_v13, %v961_v12 }
 0x3ef   :  { %966 = vst.msk [vmem:[%s1786_s9] sm:$0x1] %vm965_vm13, %v964_v41 }

</bundles_post_ra>
